<compile_context>
chip_gen: v5e
topology: v5e:2x2
jax: 0.10.0
libtpu: 0.0.40
codegen_flags: <defaults>
</compile_context>

<pallas_src>
import numpy as np
import jax
import jax.numpy as jnp
from jax import lax
from jax.experimental import pallas as pl
from jax.experimental.pallas import tpu as pltpu

INPUT_SIZE = 28          # args.input_size (vocab)
HIDDEN_SIZE = 24         # args.hidden_size
COND_SIZE = 8            # args.condition_size
HC = HIDDEN_SIZE + COND_SIZE   # h_c_size = 32
SEQ_LEN = 8              # length of input[0]
N_ENC = SEQ_LEN - 2      # encoder consumes input[1:-1]
N_DEC = SEQ_LEN - 1      # decoder teacher-forcing steps
HEAD_W = 128             # fused-head output width (padded to one full vreg)

FUSED_ORDER = (
    "cemb_pair", "cond_dec_bias",
    "enc_xtab", "enc_whh", "enc_head_w", "enc_head_b",
    "dec_xtab", "dec_whh", "dec_head_w", "dec_head_b",
)


def cvae_kernel(cond_ref, kw_ref, tokens_ref,
                cemb_pair, cond_dec_bias,
                enc_xtab, enc_whh, enc_head_w, enc_head_b,
                dec_xtab, dec_whh, dec_head_w, dec_head_b,
                noise,
                out_ref, logits_scratch):
    f32 = jnp.float32

    # ---------------- condition embeddings (once, one matmul each) ---------
    cond = cond_ref[0]
    cond_oh = (lax.broadcasted_iota(jnp.int32, (1, 4), 1) == cond).astype(f32)
    cpair = jnp.dot(cond_oh, cemb_pair[...], preferred_element_type=f32)   # (1,16)
    enc_c = cpair[:, 0:COND_SIZE]
    dec_c = cpair[:, COND_SIZE:2 * COND_SIZE]
    # decoder fused-head bias = static biases + condition embedding placed in
    # the lanes that become hid[:,24:32] and cel[:,24:32].
    dec_hb = dec_head_b[...] + jnp.dot(cond_oh, cond_dec_bias[...],
                                       preferred_element_type=f32)         # (1,128)

    # ---------------- token one-hots, built once for the whole sequence ----
    tok_col = tokens_ref[...]                                              # (SEQ,1) i32
    oh_all = (lax.broadcasted_iota(jnp.int32, (SEQ_LEN, INPUT_SIZE), 1)
              == tok_col).astype(f32)                                      # (SEQ, V)

    # one MXU op per LSTM step: gates = precomputed(emb@W_ih + b) + h @ W_hh
    def lstm_step(xw_row, h, c, whh):
        gates = xw_row + jnp.dot(h, whh, preferred_element_type=f32)       # (1, 4HC)
        s = jax.nn.sigmoid(gates)            # single EUP pass over full vreg
        i = s[:, 0:HC]
        f = s[:, HC:2 * HC]
        o = s[:, 3 * HC:4 * HC]
        g = jnp.tanh(gates[:, 2 * HC:3 * HC])
        c_new = f * c + i * g
        h_new = o * jnp.tanh(c_new)
        return h_new, c_new

    # ---------------- encoder over input[1:-1] ----------------
    # embeddings + x @ W_ih + fused bias for all 6 steps: one table matmul
    enc_xw = jnp.dot(oh_all[1:1 + N_ENC, :], enc_xtab[...],
                     preferred_element_type=f32)                           # (6, 4HC)

    e_whh = enc_whh[...]
    zeros_h = jnp.zeros((1, HIDDEN_SIZE), f32)
    h = jnp.concatenate([zeros_h, enc_c], axis=1)    # initHidden ++ condition
    c = h
    for t in range(N_ENC):                            # fully unrolled
        h, c = lstm_step(enc_xw[t:t + 1, :], h, c, e_whh)

    # fused encoder heads: [h | c] @ block-diag([mh|lvh ; mc|lvc])  (1 matmul)
    hc = jnp.concatenate([h, c], axis=1)                                   # (1, 2HC)
    heads = (jnp.dot(hc, enc_head_w[...], preferred_element_type=f32)
             + enc_head_b[...])                                            # (1, 128)
    m_h = heads[:, 0:HIDDEN_SIZE]
    lv_h = heads[:, 32:32 + HIDDEN_SIZE]
    m_c = heads[:, 64:64 + HIDDEN_SIZE]
    lv_c = heads[:, 96:96 + HIDDEN_SIZE]

    nz = noise[...]
    z_h = nz[0:1, :] * jnp.exp(lv_h * 0.5) + m_h
    z_c = nz[1:2, :] * jnp.exp(lv_c * 0.5) + m_c

    kl_h = 0.5 * jnp.sum(m_h * m_h + jnp.exp(lv_h) - 1.0 - lv_h,
                         axis=1, keepdims=True)
    kl_c = 0.5 * jnp.sum(m_c * m_c + jnp.exp(lv_c) - 1.0 - lv_c,
                         axis=1, keepdims=True)

    # ---------------- decoder (teacher forcing) ----------------
    # embeddings + x @ W_ih + fused bias for all 7 steps: one table matmul
    dec_xw = jnp.dot(oh_all[0:N_DEC, :], dec_xtab[...],
                     preferred_element_type=f32)                           # (7, 4HC)

    d_whh = dec_whh[...]
    d_hw = dec_head_w[...]
    hid = jnp.concatenate([z_h, dec_c], axis=1)                            # (1, HC)
    cel = jnp.concatenate([z_c, dec_c], axis=1)                            # (1, HC)
    for di in range(N_DEC):                           # fully unrolled
        h_new, c_new = lstm_step(dec_xw[di:di + 1, :], hid, cel, d_whh)
        # one fused matmul produces next hid (w/ cond), next cel (w/ cond),
        # and the output logits.
        u = jnp.concatenate([h_new, c_new], axis=1)                        # (1, 2HC)
        v = jnp.dot(u, d_hw, preferred_element_type=f32) + dec_hb          # (1, 128)
        hid = v[:, 0:HC]
        cel = v[:, HC:2 * HC]
        logits_scratch[di:di + 1, :] = v[:, 2 * HC:2 * HC + INPUT_SIZE]

    # deferred, batched cross-entropy over all 7 steps
    logits = logits_scratch[...]                                           # (7, V)
    mx = jnp.max(logits, axis=1, keepdims=True)
    lse = jnp.log(jnp.sum(jnp.exp(logits - mx), axis=1, keepdims=True)) + mx
    tgt_logit = jnp.sum(logits * oh_all[1:1 + N_DEC, :],
                        axis=1, keepdims=True)
    rloss = jnp.sum(lse - tgt_logit, axis=0, keepdims=True)                # (1, 1)

    reconst = rloss / f32(N_DEC)
    loss = reconst + (kl_h + kl_c) * kw_ref[0]

    out_ref[...] = jnp.concatenate([loss, reconst, kl_h, kl_c], axis=1)    # (1, 4)


def prepare_fused_params(params):
    """Build the fused / padded weight layouts (layout plumbing, no math change)."""
    f32 = jnp.float32
    P = jax.lax.Precision.HIGHEST

    # both condition embeddings from one matmul
    cemb_pair = jnp.zeros((4, 2 * COND_SIZE), f32)
    cemb_pair = cemb_pair.at[:, 0:COND_SIZE].set(params["enc_cemb"])
    cemb_pair = cemb_pair.at[:, COND_SIZE:].set(params["dec_cemb"])

    # condition contribution to the decoder fused-head bias:
    # dec_cemb lands in lanes that become hid[:,24:32] and cel[:,24:32]
    cond_dec_bias = jnp.zeros((4, HEAD_W), f32)
    cond_dec_bias = cond_dec_bias.at[:, HIDDEN_SIZE:HC].set(params["dec_cemb"])
    cond_dec_bias = cond_dec_bias.at[:, HC + HIDDEN_SIZE:2 * HC].set(params["dec_cemb"])

    # embedding @ W_ih + (b_ih+b_hh) folded into one one-hot-indexed table
    # (one-hot rows select exactly one table row, so the bias can live in it)
    enc_xtab = jnp.dot(params["enc_emb"], params["enc_wih"], precision=P) + params["enc_b"]
    dec_xtab = jnp.dot(params["dec_emb"], params["dec_wih"], precision=P) + params["dec_b"]

    # fused encoder heads: [h | c] (1,64) @ (64,128):
    #   cols  0:24 m_h(h)   cols 32:56 logv_h(h)
    #   cols 64:88 m_c(c)   cols 96:120 logv_c(c)
    enc_head_w = jnp.zeros((2 * HC, HEAD_W), f32)
    enc_head_w = enc_head_w.at[0:HC, 0:HIDDEN_SIZE].set(params["enc_mh_w"])
    enc_head_w = enc_head_w.at[0:HC, 32:32 + HIDDEN_SIZE].set(params["enc_lvh_w"])
    enc_head_w = enc_head_w.at[HC:2 * HC, 64:64 + HIDDEN_SIZE].set(params["enc_mc_w"])
    enc_head_w = enc_head_w.at[HC:2 * HC, 96:96 + HIDDEN_SIZE].set(params["enc_lvc_w"])

    enc_head_b = jnp.zeros((1, HEAD_W), f32)
    enc_head_b = enc_head_b.at[:, 0:HIDDEN_SIZE].set(params["enc_mh_b"])
    enc_head_b = enc_head_b.at[:, 32:32 + HIDDEN_SIZE].set(params["enc_lvh_b"])
    enc_head_b = enc_head_b.at[:, 64:64 + HIDDEN_SIZE].set(params["enc_mc_b"])
    enc_head_b = enc_head_b.at[:, 96:96 + HIDDEN_SIZE].set(params["enc_lvc_b"])

    # decoder fused head: [h_new | c_new] (1,64) @ (64,128) ->
    #   cols  0:24  fc_h(h_new)      (cols 24:32 stay zero -> condition via bias)
    #   cols 32:56  fc_c(c_new)      (cols 56:64 stay zero -> condition via bias)
    #   cols 64:92  out(h_new)
    dec_head_w = jnp.zeros((2 * HC, HEAD_W), f32)
    dec_head_w = dec_head_w.at[0:HC, 0:HIDDEN_SIZE].set(params["dec_fch_w"])
    dec_head_w = dec_head_w.at[HC:2 * HC, HC:HC + HIDDEN_SIZE].set(params["dec_fcc_w"])
    dec_head_w = dec_head_w.at[0:HC, 2 * HC:2 * HC + INPUT_SIZE].set(params["dec_out_w"])

    dec_head_b = jnp.zeros((1, HEAD_W), f32)
    dec_head_b = dec_head_b.at[:, 0:HIDDEN_SIZE].set(params["dec_fch_b"])
    dec_head_b = dec_head_b.at[:, HC:HC + HIDDEN_SIZE].set(params["dec_fcc_b"])
    dec_head_b = dec_head_b.at[:, 2 * HC:2 * HC + INPUT_SIZE].set(params["dec_out_b"])

    return dict(
        cemb_pair=cemb_pair, cond_dec_bias=cond_dec_bias,
        enc_xtab=enc_xtab, enc_whh=params["enc_whh"],
        enc_head_w=enc_head_w, enc_head_b=enc_head_b,
        dec_xtab=dec_xtab, dec_whh=params["dec_whh"],
        dec_head_w=dec_head_w, dec_head_b=dec_head_b,
    )


def cvae_forward(tokens, condition, kld_weight, params, noise):
    fused = prepare_fused_params(params)
    tokens_v = tokens.reshape(SEQ_LEN, 1).astype(jnp.int32)
    args = [fused[n] for n in FUSED_ORDER]

    smem = pl.BlockSpec(memory_space=pltpu.MemorySpace.SMEM)
    vmem = pl.BlockSpec(memory_space=pltpu.MemorySpace.VMEM)
    fn = pl.pallas_call(
        cvae_kernel,
        out_shape=jax.ShapeDtypeStruct((1, 4), jnp.float32),
        in_specs=[smem, smem] + [vmem] * (1 + len(args) + 1),
        out_specs=vmem,
        scratch_shapes=[pltpu.VMEM((N_DEC, INPUT_SIZE), jnp.float32)],
    )
    out = fn(condition, kld_weight, tokens_v, *args, noise)
    return out[0, 0], out[0, 1], out[0, 2], out[0, 3]


def make_params(key):
    keys = iter(jax.random.split(key, 32))

    def p(shape, scale=0.1):
        return (scale * jax.random.normal(next(keys), shape)).astype(jnp.float32)

    return dict(
        enc_emb=p((INPUT_SIZE, HC)),
        enc_cemb=p((4, COND_SIZE)),
        enc_wih=p((HC, 4 * HC)),
        enc_whh=p((HC, 4 * HC)),
        enc_b=p((1, 4 * HC)),                 # b_ih + b_hh fused
        enc_mh_w=p((HC, HIDDEN_SIZE)), enc_mh_b=p((1, HIDDEN_SIZE)),
        enc_lvh_w=p((HC, HIDDEN_SIZE)), enc_lvh_b=p((1, HIDDEN_SIZE)),
        enc_mc_w=p((HC, HIDDEN_SIZE)), enc_mc_b=p((1, HIDDEN_SIZE)),
        enc_lvc_w=p((HC, HIDDEN_SIZE)), enc_lvc_b=p((1, HIDDEN_SIZE)),
        dec_emb=p((INPUT_SIZE, HC)),
        dec_cemb=p((4, COND_SIZE)),
        dec_wih=p((HC, 4 * HC)),
        dec_whh=p((HC, 4 * HC)),
        dec_b=p((1, 4 * HC)),
        dec_fch_w=p((HC, HIDDEN_SIZE)), dec_fch_b=p((1, HIDDEN_SIZE)),
        dec_fcc_w=p((HC, HIDDEN_SIZE)), dec_fcc_b=p((1, HIDDEN_SIZE)),
        dec_out_w=p((HC, INPUT_SIZE)), dec_out_b=p((1, INPUT_SIZE)),
    )


def reference_forward(tokens, condition, kld_weight, params, noise):
    """Pure-JAX mirror of the PyTorch cVAE.forward (teacher forcing)."""
    P = jax.lax.Precision.HIGHEST
    d = lambda a, b: jnp.dot(a, b, precision=P)

    def onehot(i, n):
        return (jnp.arange(n)[None, :] == i).astype(jnp.float32)

    def lstm(x, h, c, wih, whh, b):
        g = d(x, wih) + d(h, whh) + b
        i = jax.nn.sigmoid(g[:, :HC])
        f = jax.nn.sigmoid(g[:, HC:2 * HC])
        gg = jnp.tanh(g[:, 2 * HC:3 * HC])
        o = jax.nn.sigmoid(g[:, 3 * HC:])
        c2 = f * c + i * gg
        return o * jnp.tanh(c2), c2

    cond_oh = onehot(condition, 4)
    enc_c = d(cond_oh, params["enc_cemb"])
    dec_c = d(cond_oh, params["dec_cemb"])

    h = jnp.concatenate([jnp.zeros((1, HIDDEN_SIZE), jnp.float32), enc_c], 1)
    c = h
    for t in range(1, SEQ_LEN - 1):
        x = d(onehot(int(tokens[t]), INPUT_SIZE), params["enc_emb"])
        h, c = lstm(x, h, c, params["enc_wih"], params["enc_whh"], params["enc_b"])

    m_h = d(h, params["enc_mh_w"]) + params["enc_mh_b"]
    lv_h = d(h, params["enc_lvh_w"]) + params["enc_lvh_b"]
    m_c = d(c, params["enc_mc_w"]) + params["enc_mc_b"]
    lv_c = d(c, params["enc_lvc_w"]) + params["enc_lvc_b"]
    z_h = noise[0:1] * jnp.exp(lv_h / 2) + m_h
    z_c = noise[1:2] * jnp.exp(lv_c / 2) + m_c
    kl_h = 0.5 * jnp.sum(m_h ** 2 + jnp.exp(lv_h) - 1 - lv_h)
    kl_c = 0.5 * jnp.sum(m_c ** 2 + jnp.exp(lv_c) - 1 - lv_c)

    hid, cel = z_h, z_c
    rloss = jnp.float32(0.0)
    for di in range(SEQ_LEN - 1):
        x = d(onehot(int(tokens[di]), INPUT_SIZE), params["dec_emb"])
        hc = jnp.concatenate([hid, dec_c], 1)
        cc = jnp.concatenate([cel, dec_c], 1)
        h2, c2 = lstm(x, hc, cc, params["dec_wih"], params["dec_whh"], params["dec_b"])
        hid = d(h2, params["dec_fch_w"]) + params["dec_fch_b"]
        cel = d(c2, params["dec_fcc_w"]) + params["dec_fcc_b"]
        logits = d(h2, params["dec_out_w"]) + params["dec_out_b"]
        rloss = rloss + (jax.nn.logsumexp(logits, axis=1)
                         - logits[0, int(tokens[di + 1])])[0]
    reconst = rloss / (SEQ_LEN - 1)
    loss = reconst + (kl_h + kl_c) * kld_weight
    return loss, reconst, kl_h, kl_c


if __name__ == "__main__":
    key = jax.random.PRNGKey(0)
    kp, ktok, knoise = jax.random.split(key, 3)

    params = make_params(kp)
    tokens = jax.random.randint(ktok, (SEQ_LEN,), 0, INPUT_SIZE, dtype=jnp.int32)
    condition = jnp.array([1], jnp.int32)
    kld_weight = jnp.array([0.3], jnp.float32)
    # reparameterization noise (encoder.sample_z for hidden and cell paths)
    noise = jax.random.normal(knoise, (2, HIDDEN_SIZE), jnp.float32)

    forward = jax.jit(cvae_forward)
    outs = forward(tokens, condition, kld_weight, params, noise)
    outs = jax.block_until_ready(outs)

    ref = reference_forward(np.array(tokens), int(condition[0]),
                            float(kld_weight[0]), params, noise)
    for o, r in zip(outs, ref):
        assert np.isfinite(float(o))
        np.testing.assert_allclose(float(o), float(r), rtol=2e-3, atol=1e-3)

    print("KERNEL_OK")
</pallas_src>

<mosaic_0001>
module attributes {stable_mosaic.version = 11 : i64} {
  func.func @cvae_kernel(%arg0: memref<1xi32, #tpu.memory_space<smem>>, %arg1: memref<1xf32, #tpu.memory_space<smem>>, %arg2: memref<8x1xi32, #tpu.memory_space<vmem>>, %arg3: memref<4x16xf32, #tpu.memory_space<vmem>>, %arg4: memref<4x128xf32, #tpu.memory_space<vmem>>, %arg5: memref<28x128xf32, #tpu.memory_space<vmem>>, %arg6: memref<32x128xf32, #tpu.memory_space<vmem>>, %arg7: memref<64x128xf32, #tpu.memory_space<vmem>>, %arg8: memref<1x128xf32, #tpu.memory_space<vmem>>, %arg9: memref<28x128xf32, #tpu.memory_space<vmem>>, %arg10: memref<32x128xf32, #tpu.memory_space<vmem>>, %arg11: memref<64x128xf32, #tpu.memory_space<vmem>>, %arg12: memref<1x128xf32, #tpu.memory_space<vmem>>, %arg13: memref<2x24xf32, #tpu.memory_space<vmem>>, %arg14: memref<1x4xf32, #tpu.memory_space<vmem>>, %arg15: memref<7x28xf32, #tpu.memory_space<vmem>>) attributes {dimension_semantics = [], scalar_prefetch = 0 : i64, scratch_operands = 1 : i64, tpu.core_type = #tpu.core_type<tc>} {
    %c0 = arith.constant 0 : index
    %0 = memref.load %arg0[%c0] : memref<1xi32, #tpu.memory_space<smem>>
    %1 = tpu.iota {dimensions = array<i32: 1>} : vector<1x4xi32>
    %2 = vector.broadcast %0 : i32 to vector<1x4xi32>
    %3 = arith.cmpi eq, %1, %2 : vector<1x4xi32>
    %4 = arith.extui %3 : vector<1x4xi1> to vector<1x4xi32>
    %5 = arith.sitofp %4 : vector<1x4xi32> to vector<1x4xf32>
    %c0_0 = arith.constant 0 : index
    %c0_1 = arith.constant 0 : index
    %6 = vector.load %arg3[%c0_0, %c0_1] : memref<4x16xf32, #tpu.memory_space<vmem>>, vector<4x16xf32>
    %cst = arith.constant dense<0.000000e+00> : vector<1x16xf32>
    %7 = tpu.matmul %5, %6, %cst {dimension_numbers = #tpu.dot_dimension_numbers<[1], [0], [0], [1], [0, 0, 1, 1], [], []>} : vector<1x4xf32>, vector<4x16xf32>, vector<1x16xf32> -> vector<1x16xf32>
    %8 = vector.extract_strided_slice %7 {offsets = [0, 0], sizes = [1, 8], strides = [1, 1]} : vector<1x16xf32> to vector<1x8xf32>
    %9 = vector.extract_strided_slice %7 {offsets = [0, 8], sizes = [1, 8], strides = [1, 1]} : vector<1x16xf32> to vector<1x8xf32>
    %c0_2 = arith.constant 0 : index
    %c0_3 = arith.constant 0 : index
    %10 = vector.load %arg12[%c0_2, %c0_3] : memref<1x128xf32, #tpu.memory_space<vmem>>, vector<1x128xf32>
    %c0_4 = arith.constant 0 : index
    %c0_5 = arith.constant 0 : index
    %11 = vector.load %arg4[%c0_4, %c0_5] : memref<4x128xf32, #tpu.memory_space<vmem>>, vector<4x128xf32>
    %cst_6 = arith.constant dense<0.000000e+00> : vector<1x128xf32>
    %12 = tpu.matmul %5, %11, %cst_6 {dimension_numbers = #tpu.dot_dimension_numbers<[1], [0], [0], [1], [0, 0, 1, 1], [], []>} : vector<1x4xf32>, vector<4x128xf32>, vector<1x128xf32> -> vector<1x128xf32>
    %13 = arith.addf %10, %12 : vector<1x128xf32>
    %c0_7 = arith.constant 0 : index
    %c0_8 = arith.constant 0 : index
    %14 = vector.load %arg2[%c0_7, %c0_8] : memref<8x1xi32, #tpu.memory_space<vmem>>, vector<8x1xi32>
    %15 = tpu.iota {dimensions = array<i32: 1>} : vector<8x28xi32>
    %16 = vector.broadcast %14 : vector<8x1xi32> to vector<8x28xi32>
    %17 = arith.cmpi eq, %15, %16 : vector<8x28xi32>
    %18 = arith.extui %17 : vector<8x28xi1> to vector<8x28xi32>
    %19 = arith.sitofp %18 : vector<8x28xi32> to vector<8x28xf32>
    %20 = vector.extract_strided_slice %19 {offsets = [1, 0], sizes = [6, 28], strides = [1, 1]} : vector<8x28xf32> to vector<6x28xf32>
    %c0_9 = arith.constant 0 : index
    %c0_10 = arith.constant 0 : index
    %21 = vector.load %arg5[%c0_9, %c0_10] : memref<28x128xf32, #tpu.memory_space<vmem>>, vector<28x128xf32>
    %cst_11 = arith.constant dense<0.000000e+00> : vector<6x128xf32>
    %22 = tpu.matmul %20, %21, %cst_11 {dimension_numbers = #tpu.dot_dimension_numbers<[1], [0], [0], [1], [0, 0, 1, 1], [], []>} : vector<6x28xf32>, vector<28x128xf32>, vector<6x128xf32> -> vector<6x128xf32>
    %c0_12 = arith.constant 0 : index
    %c0_13 = arith.constant 0 : index
    %23 = vector.load %arg6[%c0_12, %c0_13] : memref<32x128xf32, #tpu.memory_space<vmem>>, vector<32x128xf32>
    %cst_14 = arith.constant 0.000000e+00 : f32
    %24 = vector.broadcast %cst_14 : f32 to vector<1x24xf32>
    %25 = tpu.concatenate %24, %8 in 1 : vector<1x24xf32>, vector<1x8xf32> -> vector<1x32xf32>
    %26 = vector.extract_strided_slice %22 {offsets = [0, 0], sizes = [1, 128], strides = [1, 1]} : vector<6x128xf32> to vector<1x128xf32>
    %cst_15 = arith.constant dense<0.000000e+00> : vector<1x128xf32>
    %27 = tpu.matmul %25, %23, %cst_15 {dimension_numbers = #tpu.dot_dimension_numbers<[1], [0], [0], [1], [0, 0, 1, 1], [], []>} : vector<1x32xf32>, vector<32x128xf32>, vector<1x128xf32> -> vector<1x128xf32>
    %28 = arith.addf %26, %27 : vector<1x128xf32>
    %29 = arith.negf %28 : vector<1x128xf32>
    %30 = math.exp %29 : vector<1x128xf32>
    %cst_16 = arith.constant 1.000000e+00 : f32
    %31 = vector.broadcast %cst_16 : f32 to vector<1x128xf32>
    %32 = arith.addf %31, %30 : vector<1x128xf32>
    %33 = arith.divf %31, %32 : vector<1x128xf32>
    %34 = vector.extract_strided_slice %33 {offsets = [0, 0], sizes = [1, 32], strides = [1, 1]} : vector<1x128xf32> to vector<1x32xf32>
    %35 = vector.extract_strided_slice %33 {offsets = [0, 32], sizes = [1, 32], strides = [1, 1]} : vector<1x128xf32> to vector<1x32xf32>
    %36 = vector.extract_strided_slice %33 {offsets = [0, 96], sizes = [1, 32], strides = [1, 1]} : vector<1x128xf32> to vector<1x32xf32>
    %37 = vector.extract_strided_slice %28 {offsets = [0, 64], sizes = [1, 32], strides = [1, 1]} : vector<1x128xf32> to vector<1x32xf32>
    %38 = math.tanh %37 : vector<1x32xf32>
    %39 = arith.mulf %35, %25 : vector<1x32xf32>
    %40 = arith.mulf %34, %38 : vector<1x32xf32>
    %41 = arith.addf %39, %40 : vector<1x32xf32>
    %42 = math.tanh %41 : vector<1x32xf32>
    %43 = arith.mulf %36, %42 : vector<1x32xf32>
    %44 = vector.extract_strided_slice %22 {offsets = [1, 0], sizes = [1, 128], strides = [1, 1]} : vector<6x128xf32> to vector<1x128xf32>
    %cst_17 = arith.constant dense<0.000000e+00> : vector<1x128xf32>
    %45 = tpu.matmul %43, %23, %cst_17 {dimension_numbers = #tpu.dot_dimension_numbers<[1], [0], [0], [1], [0, 0, 1, 1], [], []>} : vector<1x32xf32>, vector<32x128xf32>, vector<1x128xf32> -> vector<1x128xf32>
    %46 = arith.addf %44, %45 : vector<1x128xf32>
    %47 = arith.negf %46 : vector<1x128xf32>
    %48 = math.exp %47 : vector<1x128xf32>
    %cst_18 = arith.constant 1.000000e+00 : f32
    %49 = vector.broadcast %cst_18 : f32 to vector<1x128xf32>
    %50 = arith.addf %49, %48 : vector<1x128xf32>
    %51 = arith.divf %49, %50 : vector<1x128xf32>
    %52 = vector.extract_strided_slice %51 {offsets = [0, 0], sizes = [1, 32], strides = [1, 1]} : vector<1x128xf32> to vector<1x32xf32>
    %53 = vector.extract_strided_slice %51 {offsets = [0, 32], sizes = [1, 32], strides = [1, 1]} : vector<1x128xf32> to vector<1x32xf32>
    %54 = vector.extract_strided_slice %51 {offsets = [0, 96], sizes = [1, 32], strides = [1, 1]} : vector<1x128xf32> to vector<1x32xf32>
    %55 = vector.extract_strided_slice %46 {offsets = [0, 64], sizes = [1, 32], strides = [1, 1]} : vector<1x128xf32> to vector<1x32xf32>
    %56 = math.tanh %55 : vector<1x32xf32>
    %57 = arith.mulf %53, %41 : vector<1x32xf32>
    %58 = arith.mulf %52, %56 : vector<1x32xf32>
    %59 = arith.addf %57, %58 : vector<1x32xf32>
    %60 = math.tanh %59 : vector<1x32xf32>
    %61 = arith.mulf %54, %60 : vector<1x32xf32>
    %62 = vector.extract_strided_slice %22 {offsets = [2, 0], sizes = [1, 128], strides = [1, 1]} : vector<6x128xf32> to vector<1x128xf32>
    %cst_19 = arith.constant dense<0.000000e+00> : vector<1x128xf32>
    %63 = tpu.matmul %61, %23, %cst_19 {dimension_numbers = #tpu.dot_dimension_numbers<[1], [0], [0], [1], [0, 0, 1, 1], [], []>} : vector<1x32xf32>, vector<32x128xf32>, vector<1x128xf32> -> vector<1x128xf32>
    %64 = arith.addf %62, %63 : vector<1x128xf32>
    %65 = arith.negf %64 : vector<1x128xf32>
    %66 = math.exp %65 : vector<1x128xf32>
    %cst_20 = arith.constant 1.000000e+00 : f32
    %67 = vector.broadcast %cst_20 : f32 to vector<1x128xf32>
    %68 = arith.addf %67, %66 : vector<1x128xf32>
    %69 = arith.divf %67, %68 : vector<1x128xf32>
    %70 = vector.extract_strided_slice %69 {offsets = [0, 0], sizes = [1, 32], strides = [1, 1]} : vector<1x128xf32> to vector<1x32xf32>
    %71 = vector.extract_strided_slice %69 {offsets = [0, 32], sizes = [1, 32], strides = [1, 1]} : vector<1x128xf32> to vector<1x32xf32>
    %72 = vector.extract_strided_slice %69 {offsets = [0, 96], sizes = [1, 32], strides = [1, 1]} : vector<1x128xf32> to vector<1x32xf32>
    %73 = vector.extract_strided_slice %64 {offsets = [0, 64], sizes = [1, 32], strides = [1, 1]} : vector<1x128xf32> to vector<1x32xf32>
    %74 = math.tanh %73 : vector<1x32xf32>
    %75 = arith.mulf %71, %59 : vector<1x32xf32>
    %76 = arith.mulf %70, %74 : vector<1x32xf32>
    %77 = arith.addf %75, %76 : vector<1x32xf32>
    %78 = math.tanh %77 : vector<1x32xf32>
    %79 = arith.mulf %72, %78 : vector<1x32xf32>
    %80 = vector.extract_strided_slice %22 {offsets = [3, 0], sizes = [1, 128], strides = [1, 1]} : vector<6x128xf32> to vector<1x128xf32>
    %cst_21 = arith.constant dense<0.000000e+00> : vector<1x128xf32>
    %81 = tpu.matmul %79, %23, %cst_21 {dimension_numbers = #tpu.dot_dimension_numbers<[1], [0], [0], [1], [0, 0, 1, 1], [], []>} : vector<1x32xf32>, vector<32x128xf32>, vector<1x128xf32> -> vector<1x128xf32>
    %82 = arith.addf %80, %81 : vector<1x128xf32>
    %83 = arith.negf %82 : vector<1x128xf32>
    %84 = math.exp %83 : vector<1x128xf32>
    %cst_22 = arith.constant 1.000000e+00 : f32
    %85 = vector.broadcast %cst_22 : f32 to vector<1x128xf32>
    %86 = arith.addf %85, %84 : vector<1x128xf32>
    %87 = arith.divf %85, %86 : vector<1x128xf32>
    %88 = vector.extract_strided_slice %87 {offsets = [0, 0], sizes = [1, 32], strides = [1, 1]} : vector<1x128xf32> to vector<1x32xf32>
    %89 = vector.extract_strided_slice %87 {offsets = [0, 32], sizes = [1, 32], strides = [1, 1]} : vector<1x128xf32> to vector<1x32xf32>
    %90 = vector.extract_strided_slice %87 {offsets = [0, 96], sizes = [1, 32], strides = [1, 1]} : vector<1x128xf32> to vector<1x32xf32>
    %91 = vector.extract_strided_slice %82 {offsets = [0, 64], sizes = [1, 32], strides = [1, 1]} : vector<1x128xf32> to vector<1x32xf32>
    %92 = math.tanh %91 : vector<1x32xf32>
    %93 = arith.mulf %89, %77 : vector<1x32xf32>
    %94 = arith.mulf %88, %92 : vector<1x32xf32>
    %95 = arith.addf %93, %94 : vector<1x32xf32>
    %96 = math.tanh %95 : vector<1x32xf32>
    %97 = arith.mulf %90, %96 : vector<1x32xf32>
    %98 = vector.extract_strided_slice %22 {offsets = [4, 0], sizes = [1, 128], strides = [1, 1]} : vector<6x128xf32> to vector<1x128xf32>
    %cst_23 = arith.constant dense<0.000000e+00> : vector<1x128xf32>
    %99 = tpu.matmul %97, %23, %cst_23 {dimension_numbers = #tpu.dot_dimension_numbers<[1], [0], [0], [1], [0, 0, 1, 1], [], []>} : vector<1x32xf32>, vector<32x128xf32>, vector<1x128xf32> -> vector<1x128xf32>
    %100 = arith.addf %98, %99 : vector<1x128xf32>
    %101 = arith.negf %100 : vector<1x128xf32>
    %102 = math.exp %101 : vector<1x128xf32>
    %cst_24 = arith.constant 1.000000e+00 : f32
    %103 = vector.broadcast %cst_24 : f32 to vector<1x128xf32>
    %104 = arith.addf %103, %102 : vector<1x128xf32>
    %105 = arith.divf %103, %104 : vector<1x128xf32>
    %106 = vector.extract_strided_slice %105 {offsets = [0, 0], sizes = [1, 32], strides = [1, 1]} : vector<1x128xf32> to vector<1x32xf32>
    %107 = vector.extract_strided_slice %105 {offsets = [0, 32], sizes = [1, 32], strides = [1, 1]} : vector<1x128xf32> to vector<1x32xf32>
    %108 = vector.extract_strided_slice %105 {offsets = [0, 96], sizes = [1, 32], strides = [1, 1]} : vector<1x128xf32> to vector<1x32xf32>
    %109 = vector.extract_strided_slice %100 {offsets = [0, 64], sizes = [1, 32], strides = [1, 1]} : vector<1x128xf32> to vector<1x32xf32>
    %110 = math.tanh %109 : vector<1x32xf32>
    %111 = arith.mulf %107, %95 : vector<1x32xf32>
    %112 = arith.mulf %106, %110 : vector<1x32xf32>
    %113 = arith.addf %111, %112 : vector<1x32xf32>
    %114 = math.tanh %113 : vector<1x32xf32>
    %115 = arith.mulf %108, %114 : vector<1x32xf32>
    %116 = vector.extract_strided_slice %22 {offsets = [5, 0], sizes = [1, 128], strides = [1, 1]} : vector<6x128xf32> to vector<1x128xf32>
    %cst_25 = arith.constant dense<0.000000e+00> : vector<1x128xf32>
    %117 = tpu.matmul %115, %23, %cst_25 {dimension_numbers = #tpu.dot_dimension_numbers<[1], [0], [0], [1], [0, 0, 1, 1], [], []>} : vector<1x32xf32>, vector<32x128xf32>, vector<1x128xf32> -> vector<1x128xf32>
    %118 = arith.addf %116, %117 : vector<1x128xf32>
    %119 = arith.negf %118 : vector<1x128xf32>
    %120 = math.exp %119 : vector<1x128xf32>
    %cst_26 = arith.constant 1.000000e+00 : f32
    %121 = vector.broadcast %cst_26 : f32 to vector<1x128xf32>
    %122 = arith.addf %121, %120 : vector<1x128xf32>
    %123 = arith.divf %121, %122 : vector<1x128xf32>
    %124 = vector.extract_strided_slice %123 {offsets = [0, 0], sizes = [1, 32], strides = [1, 1]} : vector<1x128xf32> to vector<1x32xf32>
    %125 = vector.extract_strided_slice %123 {offsets = [0, 32], sizes = [1, 32], strides = [1, 1]} : vector<1x128xf32> to vector<1x32xf32>
    %126 = vector.extract_strided_slice %123 {offsets = [0, 96], sizes = [1, 32], strides = [1, 1]} : vector<1x128xf32> to vector<1x32xf32>
    %127 = vector.extract_strided_slice %118 {offsets = [0, 64], sizes = [1, 32], strides = [1, 1]} : vector<1x128xf32> to vector<1x32xf32>
    %128 = math.tanh %127 : vector<1x32xf32>
    %129 = arith.mulf %125, %113 : vector<1x32xf32>
    %130 = arith.mulf %124, %128 : vector<1x32xf32>
    %131 = arith.addf %129, %130 : vector<1x32xf32>
    %132 = math.tanh %131 : vector<1x32xf32>
    %133 = arith.mulf %126, %132 : vector<1x32xf32>
    %134 = tpu.concatenate %133, %131 in 1 : vector<1x32xf32>, vector<1x32xf32> -> vector<1x64xf32>
    %c0_27 = arith.constant 0 : index
    %c0_28 = arith.constant 0 : index
    %135 = vector.load %arg7[%c0_27, %c0_28] : memref<64x128xf32, #tpu.memory_space<vmem>>, vector<64x128xf32>
    %cst_29 = arith.constant dense<0.000000e+00> : vector<1x128xf32>
    %136 = tpu.matmul %134, %135, %cst_29 {dimension_numbers = #tpu.dot_dimension_numbers<[1], [0], [0], [1], [0, 0, 1, 1], [], []>} : vector<1x64xf32>, vector<64x128xf32>, vector<1x128xf32> -> vector<1x128xf32>
    %c0_30 = arith.constant 0 : index
    %c0_31 = arith.constant 0 : index
    %137 = vector.load %arg8[%c0_30, %c0_31] : memref<1x128xf32, #tpu.memory_space<vmem>>, vector<1x128xf32>
    %138 = arith.addf %136, %137 : vector<1x128xf32>
    %139 = vector.extract_strided_slice %138 {offsets = [0, 0], sizes = [1, 24], strides = [1, 1]} : vector<1x128xf32> to vector<1x24xf32>
    %140 = vector.extract_strided_slice %138 {offsets = [0, 32], sizes = [1, 24], strides = [1, 1]} : vector<1x128xf32> to vector<1x24xf32>
    %141 = vector.extract_strided_slice %138 {offsets = [0, 64], sizes = [1, 24], strides = [1, 1]} : vector<1x128xf32> to vector<1x24xf32>
    %142 = vector.extract_strided_slice %138 {offsets = [0, 96], sizes = [1, 24], strides = [1, 1]} : vector<1x128xf32> to vector<1x24xf32>
    %c0_32 = arith.constant 0 : index
    %c0_33 = arith.constant 0 : index
    %143 = vector.load %arg13[%c0_32, %c0_33] : memref<2x24xf32, #tpu.memory_space<vmem>>, vector<2x24xf32>
    %144 = vector.extract_strided_slice %143 {offsets = [0, 0], sizes = [1, 24], strides = [1, 1]} : vector<2x24xf32> to vector<1x24xf32>
    %cst_34 = arith.constant 5.000000e-01 : f32
    %145 = vector.broadcast %cst_34 : f32 to vector<1x24xf32>
    %146 = arith.mulf %140, %145 : vector<1x24xf32>
    %147 = math.exp %146 : vector<1x24xf32>
    %148 = arith.mulf %144, %147 : vector<1x24xf32>
    %149 = arith.addf %148, %139 : vector<1x24xf32>
    %150 = vector.extract_strided_slice %143 {offsets = [1, 0], sizes = [1, 24], strides = [1, 1]} : vector<2x24xf32> to vector<1x24xf32>
    %cst_35 = arith.constant 5.000000e-01 : f32
    %151 = vector.broadcast %cst_35 : f32 to vector<1x24xf32>
    %152 = arith.mulf %142, %151 : vector<1x24xf32>
    %153 = math.exp %152 : vector<1x24xf32>
    %154 = arith.mulf %150, %153 : vector<1x24xf32>
    %155 = arith.addf %154, %141 : vector<1x24xf32>
    %156 = arith.mulf %139, %139 : vector<1x24xf32>
    %157 = math.exp %140 : vector<1x24xf32>
    %158 = arith.addf %156, %157 : vector<1x24xf32>
    %cst_36 = arith.constant 1.000000e+00 : f32
    %159 = vector.broadcast %cst_36 : f32 to vector<1x24xf32>
    %160 = arith.subf %158, %159 : vector<1x24xf32>
    %161 = arith.subf %160, %140 : vector<1x24xf32>
    %cst_37 = arith.constant dense<0.000000e+00> : vector<1xf32>
    %162 = vector.multi_reduction <add>, %161, %cst_37 [1] : vector<1x24xf32> to vector<1xf32>
    %163 = vector.shape_cast %162 : vector<1xf32> to vector<1x1xf32>
    %cst_38 = arith.constant 5.000000e-01 : f32
    %164 = vector.broadcast %cst_38 : f32 to vector<1x1xf32>
    %165 = arith.mulf %164, %163 : vector<1x1xf32>
    %166 = arith.mulf %141, %141 : vector<1x24xf32>
    %167 = math.exp %142 : vector<1x24xf32>
    %168 = arith.addf %166, %167 : vector<1x24xf32>
    %cst_39 = arith.constant 1.000000e+00 : f32
    %169 = vector.broadcast %cst_39 : f32 to vector<1x24xf32>
    %170 = arith.subf %168, %169 : vector<1x24xf32>
    %171 = arith.subf %170, %142 : vector<1x24xf32>
    %cst_40 = arith.constant dense<0.000000e+00> : vector<1xf32>
    %172 = vector.multi_reduction <add>, %171, %cst_40 [1] : vector<1x24xf32> to vector<1xf32>
    %173 = vector.shape_cast %172 : vector<1xf32> to vector<1x1xf32>
    %cst_41 = arith.constant 5.000000e-01 : f32
    %174 = vector.broadcast %cst_41 : f32 to vector<1x1xf32>
    %175 = arith.mulf %174, %173 : vector<1x1xf32>
    %176 = vector.extract_strided_slice %19 {offsets = [0, 0], sizes = [7, 28], strides = [1, 1]} : vector<8x28xf32> to vector<7x28xf32>
    %c0_42 = arith.constant 0 : index
    %c0_43 = arith.constant 0 : index
    %177 = vector.load %arg9[%c0_42, %c0_43] : memref<28x128xf32, #tpu.memory_space<vmem>>, vector<28x128xf32>
    %cst_44 = arith.constant dense<0.000000e+00> : vector<7x128xf32>
    %178 = tpu.matmul %176, %177, %cst_44 {dimension_numbers = #tpu.dot_dimension_numbers<[1], [0], [0], [1], [0, 0, 1, 1], [], []>} : vector<7x28xf32>, vector<28x128xf32>, vector<7x128xf32> -> vector<7x128xf32>
    %c0_45 = arith.constant 0 : index
    %c0_46 = arith.constant 0 : index
    %179 = vector.load %arg10[%c0_45, %c0_46] : memref<32x128xf32, #tpu.memory_space<vmem>>, vector<32x128xf32>
    %c0_47 = arith.constant 0 : index
    %c0_48 = arith.constant 0 : index
    %180 = vector.load %arg11[%c0_47, %c0_48] : memref<64x128xf32, #tpu.memory_space<vmem>>, vector<64x128xf32>
    %181 = tpu.concatenate %149, %9 in 1 : vector<1x24xf32>, vector<1x8xf32> -> vector<1x32xf32>
    %182 = tpu.concatenate %155, %9 in 1 : vector<1x24xf32>, vector<1x8xf32> -> vector<1x32xf32>
    %183 = vector.extract_strided_slice %178 {offsets = [0, 0], sizes = [1, 128], strides = [1, 1]} : vector<7x128xf32> to vector<1x128xf32>
    %cst_49 = arith.constant dense<0.000000e+00> : vector<1x128xf32>
    %184 = tpu.matmul %181, %179, %cst_49 {dimension_numbers = #tpu.dot_dimension_numbers<[1], [0], [0], [1], [0, 0, 1, 1], [], []>} : vector<1x32xf32>, vector<32x128xf32>, vector<1x128xf32> -> vector<1x128xf32>
    %185 = arith.addf %183, %184 : vector<1x128xf32>
    %186 = arith.negf %185 : vector<1x128xf32>
    %187 = math.exp %186 : vector<1x128xf32>
    %cst_50 = arith.constant 1.000000e+00 : f32
    %188 = vector.broadcast %cst_50 : f32 to vector<1x128xf32>
    %189 = arith.addf %188, %187 : vector<1x128xf32>
    %190 = arith.divf %188, %189 : vector<1x128xf32>
    %191 = vector.extract_strided_slice %190 {offsets = [0, 0], sizes = [1, 32], strides = [1, 1]} : vector<1x128xf32> to vector<1x32xf32>
    %192 = vector.extract_strided_slice %190 {offsets = [0, 32], sizes = [1, 32], strides = [1, 1]} : vector<1x128xf32> to vector<1x32xf32>
    %193 = vector.extract_strided_slice %190 {offsets = [0, 96], sizes = [1, 32], strides = [1, 1]} : vector<1x128xf32> to vector<1x32xf32>
    %194 = vector.extract_strided_slice %185 {offsets = [0, 64], sizes = [1, 32], strides = [1, 1]} : vector<1x128xf32> to vector<1x32xf32>
    %195 = math.tanh %194 : vector<1x32xf32>
    %196 = arith.mulf %192, %182 : vector<1x32xf32>
    %197 = arith.mulf %191, %195 : vector<1x32xf32>
    %198 = arith.addf %196, %197 : vector<1x32xf32>
    %199 = math.tanh %198 : vector<1x32xf32>
    %200 = arith.mulf %193, %199 : vector<1x32xf32>
    %201 = tpu.concatenate %200, %198 in 1 : vector<1x32xf32>, vector<1x32xf32> -> vector<1x64xf32>
    %cst_51 = arith.constant dense<0.000000e+00> : vector<1x128xf32>
    %202 = tpu.matmul %201, %180, %cst_51 {dimension_numbers = #tpu.dot_dimension_numbers<[1], [0], [0], [1], [0, 0, 1, 1], [], []>} : vector<1x64xf32>, vector<64x128xf32>, vector<1x128xf32> -> vector<1x128xf32>
    %203 = arith.addf %202, %13 : vector<1x128xf32>
    %204 = vector.extract_strided_slice %203 {offsets = [0, 0], sizes = [1, 32], strides = [1, 1]} : vector<1x128xf32> to vector<1x32xf32>
    %205 = vector.extract_strided_slice %203 {offsets = [0, 32], sizes = [1, 32], strides = [1, 1]} : vector<1x128xf32> to vector<1x32xf32>
    %206 = vector.extract_strided_slice %203 {offsets = [0, 64], sizes = [1, 28], strides = [1, 1]} : vector<1x128xf32> to vector<1x28xf32>
    %c0_52 = arith.constant 0 : index
    %c0_53 = arith.constant 0 : index
    %207 = vector.load %arg15[%c0_52, %c0_53] : memref<7x28xf32, #tpu.memory_space<vmem>>, vector<1x28xf32>
    tpu.vector_store %arg15[%c0_52, %c0_53], %206 {strides = array<i32>} : memref<7x28xf32, #tpu.memory_space<vmem>>, vector<1x28xf32>,
    %208 = vector.extract_strided_slice %178 {offsets = [1, 0], sizes = [1, 128], strides = [1, 1]} : vector<7x128xf32> to vector<1x128xf32>
    %cst_54 = arith.constant dense<0.000000e+00> : vector<1x128xf32>
    %209 = tpu.matmul %204, %179, %cst_54 {dimension_numbers = #tpu.dot_dimension_numbers<[1], [0], [0], [1], [0, 0, 1, 1], [], []>} : vector<1x32xf32>, vector<32x128xf32>, vector<1x128xf32> -> vector<1x128xf32>
    %210 = arith.addf %208, %209 : vector<1x128xf32>
    %211 = arith.negf %210 : vector<1x128xf32>
    %212 = math.exp %211 : vector<1x128xf32>
    %cst_55 = arith.constant 1.000000e+00 : f32
    %213 = vector.broadcast %cst_55 : f32 to vector<1x128xf32>
    %214 = arith.addf %213, %212 : vector<1x128xf32>
    %215 = arith.divf %213, %214 : vector<1x128xf32>
    %216 = vector.extract_strided_slice %215 {offsets = [0, 0], sizes = [1, 32], strides = [1, 1]} : vector<1x128xf32> to vector<1x32xf32>
    %217 = vector.extract_strided_slice %215 {offsets = [0, 32], sizes = [1, 32], strides = [1, 1]} : vector<1x128xf32> to vector<1x32xf32>
    %218 = vector.extract_strided_slice %215 {offsets = [0, 96], sizes = [1, 32], strides = [1, 1]} : vector<1x128xf32> to vector<1x32xf32>
    %219 = vector.extract_strided_slice %210 {offsets = [0, 64], sizes = [1, 32], strides = [1, 1]} : vector<1x128xf32> to vector<1x32xf32>
    %220 = math.tanh %219 : vector<1x32xf32>
    %221 = arith.mulf %217, %205 : vector<1x32xf32>
    %222 = arith.mulf %216, %220 : vector<1x32xf32>
    %223 = arith.addf %221, %222 : vector<1x32xf32>
    %224 = math.tanh %223 : vector<1x32xf32>
    %225 = arith.mulf %218, %224 : vector<1x32xf32>
    %226 = tpu.concatenate %225, %223 in 1 : vector<1x32xf32>, vector<1x32xf32> -> vector<1x64xf32>
    %cst_56 = arith.constant dense<0.000000e+00> : vector<1x128xf32>
    %227 = tpu.matmul %226, %180, %cst_56 {dimension_numbers = #tpu.dot_dimension_numbers<[1], [0], [0], [1], [0, 0, 1, 1], [], []>} : vector<1x64xf32>, vector<64x128xf32>, vector<1x128xf32> -> vector<1x128xf32>
    %228 = arith.addf %227, %13 : vector<1x128xf32>
    %229 = vector.extract_strided_slice %228 {offsets = [0, 0], sizes = [1, 32], strides = [1, 1]} : vector<1x128xf32> to vector<1x32xf32>
    %230 = vector.extract_strided_slice %228 {offsets = [0, 32], sizes = [1, 32], strides = [1, 1]} : vector<1x128xf32> to vector<1x32xf32>
    %231 = vector.extract_strided_slice %228 {offsets = [0, 64], sizes = [1, 28], strides = [1, 1]} : vector<1x128xf32> to vector<1x28xf32>
    %c1 = arith.constant 1 : index
    %c0_57 = arith.constant 0 : index
    %232 = vector.load %arg15[%c1, %c0_57] : memref<7x28xf32, #tpu.memory_space<vmem>>, vector<1x28xf32>
    tpu.vector_store %arg15[%c1, %c0_57], %231 {strides = array<i32>} : memref<7x28xf32, #tpu.memory_space<vmem>>, vector<1x28xf32>,
    %233 = vector.extract_strided_slice %178 {offsets = [2, 0], sizes = [1, 128], strides = [1, 1]} : vector<7x128xf32> to vector<1x128xf32>
    %cst_58 = arith.constant dense<0.000000e+00> : vector<1x128xf32>
    %234 = tpu.matmul %229, %179, %cst_58 {dimension_numbers = #tpu.dot_dimension_numbers<[1], [0], [0], [1], [0, 0, 1, 1], [], []>} : vector<1x32xf32>, vector<32x128xf32>, vector<1x128xf32> -> vector<1x128xf32>
    %235 = arith.addf %233, %234 : vector<1x128xf32>
    %236 = arith.negf %235 : vector<1x128xf32>
    %237 = math.exp %236 : vector<1x128xf32>
    %cst_59 = arith.constant 1.000000e+00 : f32
    %238 = vector.broadcast %cst_59 : f32 to vector<1x128xf32>
    %239 = arith.addf %238, %237 : vector<1x128xf32>
    %240 = arith.divf %238, %239 : vector<1x128xf32>
    %241 = vector.extract_strided_slice %240 {offsets = [0, 0], sizes = [1, 32], strides = [1, 1]} : vector<1x128xf32> to vector<1x32xf32>
    %242 = vector.extract_strided_slice %240 {offsets = [0, 32], sizes = [1, 32], strides = [1, 1]} : vector<1x128xf32> to vector<1x32xf32>
    %243 = vector.extract_strided_slice %240 {offsets = [0, 96], sizes = [1, 32], strides = [1, 1]} : vector<1x128xf32> to vector<1x32xf32>
    %244 = vector.extract_strided_slice %235 {offsets = [0, 64], sizes = [1, 32], strides = [1, 1]} : vector<1x128xf32> to vector<1x32xf32>
    %245 = math.tanh %244 : vector<1x32xf32>
    %246 = arith.mulf %242, %230 : vector<1x32xf32>
    %247 = arith.mulf %241, %245 : vector<1x32xf32>
    %248 = arith.addf %246, %247 : vector<1x32xf32>
    %249 = math.tanh %248 : vector<1x32xf32>
    %250 = arith.mulf %243, %249 : vector<1x32xf32>
    %251 = tpu.concatenate %250, %248 in 1 : vector<1x32xf32>, vector<1x32xf32> -> vector<1x64xf32>
    %cst_60 = arith.constant dense<0.000000e+00> : vector<1x128xf32>
    %252 = tpu.matmul %251, %180, %cst_60 {dimension_numbers = #tpu.dot_dimension_numbers<[1], [0], [0], [1], [0, 0, 1, 1], [], []>} : vector<1x64xf32>, vector<64x128xf32>, vector<1x128xf32> -> vector<1x128xf32>
    %253 = arith.addf %252, %13 : vector<1x128xf32>
    %254 = vector.extract_strided_slice %253 {offsets = [0, 0], sizes = [1, 32], strides = [1, 1]} : vector<1x128xf32> to vector<1x32xf32>
    %255 = vector.extract_strided_slice %253 {offsets = [0, 32], sizes = [1, 32], strides = [1, 1]} : vector<1x128xf32> to vector<1x32xf32>
    %256 = vector.extract_strided_slice %253 {offsets = [0, 64], sizes = [1, 28], strides = [1, 1]} : vector<1x128xf32> to vector<1x28xf32>
    %c2 = arith.constant 2 : index
    %c0_61 = arith.constant 0 : index
    %257 = vector.load %arg15[%c2, %c0_61] : memref<7x28xf32, #tpu.memory_space<vmem>>, vector<1x28xf32>
    tpu.vector_store %arg15[%c2, %c0_61], %256 {strides = array<i32>} : memref<7x28xf32, #tpu.memory_space<vmem>>, vector<1x28xf32>,
    %258 = vector.extract_strided_slice %178 {offsets = [3, 0], sizes = [1, 128], strides = [1, 1]} : vector<7x128xf32> to vector<1x128xf32>
    %cst_62 = arith.constant dense<0.000000e+00> : vector<1x128xf32>
    %259 = tpu.matmul %254, %179, %cst_62 {dimension_numbers = #tpu.dot_dimension_numbers<[1], [0], [0], [1], [0, 0, 1, 1], [], []>} : vector<1x32xf32>, vector<32x128xf32>, vector<1x128xf32> -> vector<1x128xf32>
    %260 = arith.addf %258, %259 : vector<1x128xf32>
    %261 = arith.negf %260 : vector<1x128xf32>
    %262 = math.exp %261 : vector<1x128xf32>
    %cst_63 = arith.constant 1.000000e+00 : f32
    %263 = vector.broadcast %cst_63 : f32 to vector<1x128xf32>
    %264 = arith.addf %263, %262 : vector<1x128xf32>
    %265 = arith.divf %263, %264 : vector<1x128xf32>
    %266 = vector.extract_strided_slice %265 {offsets = [0, 0], sizes = [1, 32], strides = [1, 1]} : vector<1x128xf32> to vector<1x32xf32>
    %267 = vector.extract_strided_slice %265 {offsets = [0, 32], sizes = [1, 32], strides = [1, 1]} : vector<1x128xf32> to vector<1x32xf32>
    %268 = vector.extract_strided_slice %265 {offsets = [0, 96], sizes = [1, 32], strides = [1, 1]} : vector<1x128xf32> to vector<1x32xf32>
    %269 = vector.extract_strided_slice %260 {offsets = [0, 64], sizes = [1, 32], strides = [1, 1]} : vector<1x128xf32> to vector<1x32xf32>
    %270 = math.tanh %269 : vector<1x32xf32>
    %271 = arith.mulf %267, %255 : vector<1x32xf32>
    %272 = arith.mulf %266, %270 : vector<1x32xf32>
    %273 = arith.addf %271, %272 : vector<1x32xf32>
    %274 = math.tanh %273 : vector<1x32xf32>
    %275 = arith.mulf %268, %274 : vector<1x32xf32>
    %276 = tpu.concatenate %275, %273 in 1 : vector<1x32xf32>, vector<1x32xf32> -> vector<1x64xf32>
    %cst_64 = arith.constant dense<0.000000e+00> : vector<1x128xf32>
    %277 = tpu.matmul %276, %180, %cst_64 {dimension_numbers = #tpu.dot_dimension_numbers<[1], [0], [0], [1], [0, 0, 1, 1], [], []>} : vector<1x64xf32>, vector<64x128xf32>, vector<1x128xf32> -> vector<1x128xf32>
    %278 = arith.addf %277, %13 : vector<1x128xf32>
    %279 = vector.extract_strided_slice %278 {offsets = [0, 0], sizes = [1, 32], strides = [1, 1]} : vector<1x128xf32> to vector<1x32xf32>
    %280 = vector.extract_strided_slice %278 {offsets = [0, 32], sizes = [1, 32], strides = [1, 1]} : vector<1x128xf32> to vector<1x32xf32>
    %281 = vector.extract_strided_slice %278 {offsets = [0, 64], sizes = [1, 28], strides = [1, 1]} : vector<1x128xf32> to vector<1x28xf32>
    %c3 = arith.constant 3 : index
    %c0_65 = arith.constant 0 : index
    %282 = vector.load %arg15[%c3, %c0_65] : memref<7x28xf32, #tpu.memory_space<vmem>>, vector<1x28xf32>
    tpu.vector_store %arg15[%c3, %c0_65], %281 {strides = array<i32>} : memref<7x28xf32, #tpu.memory_space<vmem>>, vector<1x28xf32>,
    %283 = vector.extract_strided_slice %178 {offsets = [4, 0], sizes = [1, 128], strides = [1, 1]} : vector<7x128xf32> to vector<1x128xf32>
    %cst_66 = arith.constant dense<0.000000e+00> : vector<1x128xf32>
    %284 = tpu.matmul %279, %179, %cst_66 {dimension_numbers = #tpu.dot_dimension_numbers<[1], [0], [0], [1], [0, 0, 1, 1], [], []>} : vector<1x32xf32>, vector<32x128xf32>, vector<1x128xf32> -> vector<1x128xf32>
    %285 = arith.addf %283, %284 : vector<1x128xf32>
    %286 = arith.negf %285 : vector<1x128xf32>
    %287 = math.exp %286 : vector<1x128xf32>
    %cst_67 = arith.constant 1.000000e+00 : f32
    %288 = vector.broadcast %cst_67 : f32 to vector<1x128xf32>
    %289 = arith.addf %288, %287 : vector<1x128xf32>
    %290 = arith.divf %288, %289 : vector<1x128xf32>
    %291 = vector.extract_strided_slice %290 {offsets = [0, 0], sizes = [1, 32], strides = [1, 1]} : vector<1x128xf32> to vector<1x32xf32>
    %292 = vector.extract_strided_slice %290 {offsets = [0, 32], sizes = [1, 32], strides = [1, 1]} : vector<1x128xf32> to vector<1x32xf32>
    %293 = vector.extract_strided_slice %290 {offsets = [0, 96], sizes = [1, 32], strides = [1, 1]} : vector<1x128xf32> to vector<1x32xf32>
    %294 = vector.extract_strided_slice %285 {offsets = [0, 64], sizes = [1, 32], strides = [1, 1]} : vector<1x128xf32> to vector<1x32xf32>
    %295 = math.tanh %294 : vector<1x32xf32>
    %296 = arith.mulf %292, %280 : vector<1x32xf32>
    %297 = arith.mulf %291, %295 : vector<1x32xf32>
    %298 = arith.addf %296, %297 : vector<1x32xf32>
    %299 = math.tanh %298 : vector<1x32xf32>
    %300 = arith.mulf %293, %299 : vector<1x32xf32>
    %301 = tpu.concatenate %300, %298 in 1 : vector<1x32xf32>, vector<1x32xf32> -> vector<1x64xf32>
    %cst_68 = arith.constant dense<0.000000e+00> : vector<1x128xf32>
    %302 = tpu.matmul %301, %180, %cst_68 {dimension_numbers = #tpu.dot_dimension_numbers<[1], [0], [0], [1], [0, 0, 1, 1], [], []>} : vector<1x64xf32>, vector<64x128xf32>, vector<1x128xf32> -> vector<1x128xf32>
    %303 = arith.addf %302, %13 : vector<1x128xf32>
    %304 = vector.extract_strided_slice %303 {offsets = [0, 0], sizes = [1, 32], strides = [1, 1]} : vector<1x128xf32> to vector<1x32xf32>
    %305 = vector.extract_strided_slice %303 {offsets = [0, 32], sizes = [1, 32], strides = [1, 1]} : vector<1x128xf32> to vector<1x32xf32>
    %306 = vector.extract_strided_slice %303 {offsets = [0, 64], sizes = [1, 28], strides = [1, 1]} : vector<1x128xf32> to vector<1x28xf32>
    %c4 = arith.constant 4 : index
    %c0_69 = arith.constant 0 : index
    %307 = vector.load %arg15[%c4, %c0_69] : memref<7x28xf32, #tpu.memory_space<vmem>>, vector<1x28xf32>
    tpu.vector_store %arg15[%c4, %c0_69], %306 {strides = array<i32>} : memref<7x28xf32, #tpu.memory_space<vmem>>, vector<1x28xf32>,
    %308 = vector.extract_strided_slice %178 {offsets = [5, 0], sizes = [1, 128], strides = [1, 1]} : vector<7x128xf32> to vector<1x128xf32>
    %cst_70 = arith.constant dense<0.000000e+00> : vector<1x128xf32>
    %309 = tpu.matmul %304, %179, %cst_70 {dimension_numbers = #tpu.dot_dimension_numbers<[1], [0], [0], [1], [0, 0, 1, 1], [], []>} : vector<1x32xf32>, vector<32x128xf32>, vector<1x128xf32> -> vector<1x128xf32>
    %310 = arith.addf %308, %309 : vector<1x128xf32>
    %311 = arith.negf %310 : vector<1x128xf32>
    %312 = math.exp %311 : vector<1x128xf32>
    %cst_71 = arith.constant 1.000000e+00 : f32
    %313 = vector.broadcast %cst_71 : f32 to vector<1x128xf32>
    %314 = arith.addf %313, %312 : vector<1x128xf32>
    %315 = arith.divf %313, %314 : vector<1x128xf32>
    %316 = vector.extract_strided_slice %315 {offsets = [0, 0], sizes = [1, 32], strides = [1, 1]} : vector<1x128xf32> to vector<1x32xf32>
    %317 = vector.extract_strided_slice %315 {offsets = [0, 32], sizes = [1, 32], strides = [1, 1]} : vector<1x128xf32> to vector<1x32xf32>
    %318 = vector.extract_strided_slice %315 {offsets = [0, 96], sizes = [1, 32], strides = [1, 1]} : vector<1x128xf32> to vector<1x32xf32>
    %319 = vector.extract_strided_slice %310 {offsets = [0, 64], sizes = [1, 32], strides = [1, 1]} : vector<1x128xf32> to vector<1x32xf32>
    %320 = math.tanh %319 : vector<1x32xf32>
    %321 = arith.mulf %317, %305 : vector<1x32xf32>
    %322 = arith.mulf %316, %320 : vector<1x32xf32>
    %323 = arith.addf %321, %322 : vector<1x32xf32>
    %324 = math.tanh %323 : vector<1x32xf32>
    %325 = arith.mulf %318, %324 : vector<1x32xf32>
    %326 = tpu.concatenate %325, %323 in 1 : vector<1x32xf32>, vector<1x32xf32> -> vector<1x64xf32>
    %cst_72 = arith.constant dense<0.000000e+00> : vector<1x128xf32>
    %327 = tpu.matmul %326, %180, %cst_72 {dimension_numbers = #tpu.dot_dimension_numbers<[1], [0], [0], [1], [0, 0, 1, 1], [], []>} : vector<1x64xf32>, vector<64x128xf32>, vector<1x128xf32> -> vector<1x128xf32>
    %328 = arith.addf %327, %13 : vector<1x128xf32>
    %329 = vector.extract_strided_slice %328 {offsets = [0, 0], sizes = [1, 32], strides = [1, 1]} : vector<1x128xf32> to vector<1x32xf32>
    %330 = vector.extract_strided_slice %328 {offsets = [0, 32], sizes = [1, 32], strides = [1, 1]} : vector<1x128xf32> to vector<1x32xf32>
    %331 = vector.extract_strided_slice %328 {offsets = [0, 64], sizes = [1, 28], strides = [1, 1]} : vector<1x128xf32> to vector<1x28xf32>
    %c5 = arith.constant 5 : index
    %c0_73 = arith.constant 0 : index
    %332 = vector.load %arg15[%c5, %c0_73] : memref<7x28xf32, #tpu.memory_space<vmem>>, vector<1x28xf32>
    tpu.vector_store %arg15[%c5, %c0_73], %331 {strides = array<i32>} : memref<7x28xf32, #tpu.memory_space<vmem>>, vector<1x28xf32>,
    %333 = vector.extract_strided_slice %178 {offsets = [6, 0], sizes = [1, 128], strides = [1, 1]} : vector<7x128xf32> to vector<1x128xf32>
    %cst_74 = arith.constant dense<0.000000e+00> : vector<1x128xf32>
    %334 = tpu.matmul %329, %179, %cst_74 {dimension_numbers = #tpu.dot_dimension_numbers<[1], [0], [0], [1], [0, 0, 1, 1], [], []>} : vector<1x32xf32>, vector<32x128xf32>, vector<1x128xf32> -> vector<1x128xf32>
    %335 = arith.addf %333, %334 : vector<1x128xf32>
    %336 = arith.negf %335 : vector<1x128xf32>
    %337 = math.exp %336 : vector<1x128xf32>
    %cst_75 = arith.constant 1.000000e+00 : f32
    %338 = vector.broadcast %cst_75 : f32 to vector<1x128xf32>
    %339 = arith.addf %338, %337 : vector<1x128xf32>
    %340 = arith.divf %338, %339 : vector<1x128xf32>
    %341 = vector.extract_strided_slice %340 {offsets = [0, 0], sizes = [1, 32], strides = [1, 1]} : vector<1x128xf32> to vector<1x32xf32>
    %342 = vector.extract_strided_slice %340 {offsets = [0, 32], sizes = [1, 32], strides = [1, 1]} : vector<1x128xf32> to vector<1x32xf32>
    %343 = vector.extract_strided_slice %340 {offsets = [0, 96], sizes = [1, 32], strides = [1, 1]} : vector<1x128xf32> to vector<1x32xf32>
    %344 = vector.extract_strided_slice %335 {offsets = [0, 64], sizes = [1, 32], strides = [1, 1]} : vector<1x128xf32> to vector<1x32xf32>
    %345 = math.tanh %344 : vector<1x32xf32>
    %346 = arith.mulf %342, %330 : vector<1x32xf32>
    %347 = arith.mulf %341, %345 : vector<1x32xf32>
    %348 = arith.addf %346, %347 : vector<1x32xf32>
    %349 = math.tanh %348 : vector<1x32xf32>
    %350 = arith.mulf %343, %349 : vector<1x32xf32>
    %351 = tpu.concatenate %350, %348 in 1 : vector<1x32xf32>, vector<1x32xf32> -> vector<1x64xf32>
    %cst_76 = arith.constant dense<0.000000e+00> : vector<1x128xf32>
    %352 = tpu.matmul %351, %180, %cst_76 {dimension_numbers = #tpu.dot_dimension_numbers<[1], [0], [0], [1], [0, 0, 1, 1], [], []>} : vector<1x64xf32>, vector<64x128xf32>, vector<1x128xf32> -> vector<1x128xf32>
    %353 = arith.addf %352, %13 : vector<1x128xf32>
    %354 = vector.extract_strided_slice %353 {offsets = [0, 64], sizes = [1, 28], strides = [1, 1]} : vector<1x128xf32> to vector<1x28xf32>
    %c6 = arith.constant 6 : index
    %c0_77 = arith.constant 0 : index
    %355 = vector.load %arg15[%c6, %c0_77] : memref<7x28xf32, #tpu.memory_space<vmem>>, vector<1x28xf32>
    tpu.vector_store %arg15[%c6, %c0_77], %354 {strides = array<i32>} : memref<7x28xf32, #tpu.memory_space<vmem>>, vector<1x28xf32>,
    %c0_78 = arith.constant 0 : index
    %c0_79 = arith.constant 0 : index
    %356 = vector.load %arg15[%c0_78, %c0_79] : memref<7x28xf32, #tpu.memory_space<vmem>>, vector<7x28xf32>
    %cst_80 = arith.constant dense<0xFF800000> : vector<7xf32>
    %357 = vector.multi_reduction <maximumf>, %356, %cst_80 [1] : vector<7x28xf32> to vector<7xf32>
    %358 = vector.shape_cast %357 : vector<7xf32> to vector<7x1xf32>
    %359 = vector.broadcast %358 : vector<7x1xf32> to vector<7x28xf32>
    %360 = arith.subf %356, %359 : vector<7x28xf32>
    %361 = math.exp %360 : vector<7x28xf32>
    %cst_81 = arith.constant dense<0.000000e+00> : vector<7xf32>
    %362 = vector.multi_reduction <add>, %361, %cst_81 [1] : vector<7x28xf32> to vector<7xf32>
    %363 = vector.shape_cast %362 : vector<7xf32> to vector<7x1xf32>
    %364 = math.log %363 : vector<7x1xf32>
    %365 = arith.addf %364, %358 : vector<7x1xf32>
    %366 = vector.extract_strided_slice %19 {offsets = [1, 0], sizes = [7, 28], strides = [1, 1]} : vector<8x28xf32> to vector<7x28xf32>
    %367 = arith.mulf %356, %366 : vector<7x28xf32>
    %cst_82 = arith.constant dense<0.000000e+00> : vector<7xf32>
    %368 = vector.multi_reduction <add>, %367, %cst_82 [1] : vector<7x28xf32> to vector<7xf32>
    %369 = vector.shape_cast %368 : vector<7xf32> to vector<7x1xf32>
    %370 = arith.subf %365, %369 : vector<7x1xf32>
    %cst_83 = arith.constant dense<0.000000e+00> : vector<1xf32>
    %371 = vector.multi_reduction <add>, %370, %cst_83 [0] : vector<7x1xf32> to vector<1xf32>
    %372 = vector.shape_cast %371 : vector<1xf32> to vector<1x1xf32>
    %cst_84 = arith.constant 7.000000e+00 : f32
    %373 = vector.broadcast %cst_84 : f32 to vector<1x1xf32>
    %374 = arith.divf %372, %373 : vector<1x1xf32>
    %375 = arith.addf %165, %175 : vector<1x1xf32>
    %c0_85 = arith.constant 0 : index
    %376 = memref.load %arg1[%c0_85] : memref<1xf32, #tpu.memory_space<smem>>
    %377 = vector.broadcast %376 : f32 to vector<1x1xf32>
    %378 = arith.mulf %375, %377 : vector<1x1xf32>
    %379 = arith.addf %374, %378 : vector<1x1xf32>
    %380 = tpu.concatenate %379, %374, %165, %175 in 1 : vector<1x1xf32>, vector<1x1xf32>, vector<1x1xf32>, vector<1x1xf32> -> vector<1x4xf32>
    %c0_86 = arith.constant 0 : index
    %c0_87 = arith.constant 0 : index
    %381 = vector.load %arg14[%c0_86, %c0_87] : memref<1x4xf32, #tpu.memory_space<vmem>>, vector<1x4xf32>
    tpu.vector_store %arg14[%c0_86, %c0_87], %380 {strides = array<i32>} : memref<1x4xf32, #tpu.memory_space<vmem>>, vector<1x4xf32>,
    return
  }
}

</mosaic_0001>

<bundles_post_ra>
// kernel: cvae_forward.1
= control target key start
LH: loop header
LB: loop body
LE: loop exit
PB: predicated region body
PF: predicated region fallthrough
CT: control target
= control target key end

     0   :  { %vm61_vm0 = vcmask 1043456   ;;  %v50_v0 = vlaneseq  ;;  %vm57_vm1 = vcmask 31744   ;;  %v1625_v4 = vmov 0.0   ;;  %s1627_s21 = smov 24   ;;  %s1629_s16 = smov 32   ;;  %s2168_s3 = inlined_call_operand.vmem [shape: f32[4,16], index: 3, kind: input, shape index: {}]   ;;  %s2169_s0 = inlined_call_operand.<no memory space> [shape: s32[1], index: 0, kind: input, shape index: {}]   ;;  %s2170_s6 = inlined_call_operand.vmem [shape: f32[32,128], index: 6, kind: input, shape index: {}]   ;;  %s2171_s2 = inlined_call_operand.vmem [shape: s32[8,1], index: 2, kind: input, shape index: {}]   ;;  %s2172_s5 = inlined_call_operand.vmem [shape: f32[28,128], index: 5, kind: input, shape index: {}]   ;;  %s2173_s4 = inlined_call_operand.vmem [shape: f32[4,128], index: 4, kind: input, shape index: {}]   ;;  %s2174_s9 = inlined_call_operand.vmem [shape: f32[28,128], index: 9, kind: input, shape index: {}]   ;;  %s2175_s7 = inlined_call_operand.vmem [shape: f32[64,128], index: 7, kind: input, shape index: {}]   ;;  %s2176_s10 = inlined_call_operand.vmem [shape: f32[32,128], index: 10, kind: input, shape index: {}]   ;;  %s2177_s8 = inlined_call_operand.vmem [shape: f32[1,128], index: 8, kind: input, shape index: {}]   ;;  %s2178_s13 = inlined_call_operand.vmem [shape: f32[2,24], index: 13, kind: input, shape index: {}]   ;;  %s2179_s11 = inlined_call_operand.vmem [shape: f32[64,128], index: 11, kind: input, shape index: {}]   ;;  %s2180_s12 = inlined_call_operand.vmem [shape: f32[1,128], index: 12, kind: input, shape index: {}]   ;;  %s2181_s1 = inlined_call_operand.<no memory space> [shape: f32[1], index: 1, kind: input, shape index: {}]   ;;  %s2182_s14 = inlined_call_operand.vmem [shape: f32[1,4], index: 14, kind: output, shape index: {}]  }
   0x1   :  { %v56_v1 = vld [vmem:[%s2168_s3] sm:$0xf]  ;;  %v52_v2 = vstv %s2169_s0  ;;  %v1626_v6 = vmov 0   ;;  %v1722_v7 = vld [vmem:[%s2170_s6 + $0x18] sm:$0xff]  ;;  %v1727_v8 = vld [vmem:[%s2170_s6 + $0x10] sm:$0xff]  ;;  %vm158_vm3 = vcmask 195584  }
   0x2   :  { %1458 = vmatpush.msk.msra.mxu0 %vm61_vm0, %v56_v1  ;;  %v51_v3 = vand.u32 127, %v50_v0  ;;  %1510 = vset.pattern.permute.xlu0 %v1626_v6  ;;  %v1734_v9 = vld [vmem:[%s2170_s6 + $0x8] sm:$0xff]  ;;  %v111_v11 = vld [vmem:[%s2171_s2] sm:$0xff]  ;;  %v121_v13 = vld [vmem:[%s2172_s5 + $0x18] sm:$0xf]  ;;  %vm160_vm4 = vcmask 261120  }
   0x3   :  { %176 = vmatpush.msra.mxu3 %v1722_v7  ;;  %382 = vmatpush.msra.mxu2 %v1722_v7  ;;  %v1749_v12 = vld [vmem:[%s2170_s6] sm:$0xff]  ;;  %v120_v14 = vld [vmem:[%s2172_s5 + $0x10] sm:$0xff]  ;;  %v119_v15 = vld [vmem:[%s2172_s5 + $0x8] sm:$0xff]  ;;  %vm124_vm6 = vcmask 228352   ;;  %s1631_s24 = smov 96  }
   0x4   :  { %vm53_vm2 = vcmp.eq.s32.totalorder %v51_v3, %v52_v2  ;;  %1463 = vmatpush.msk.msrb.mxu0 %vm61_vm0, %v121_v13  ;;  %v118_v16 = vld [vmem:[%s2172_s5] sm:$0xff]  ;;  %s1628_s5 = smov 64  }
   0x5   :  { %v1715_v5 = vsel %vm53_vm2, 1.0, %v1625_v4  ;;  %177 = vmatpush.msra.mxu3 %v1727_v8  ;;  %383 = vmatpush.msra.mxu2 %v1727_v8 }
   0x6   :  { %1459 = vmatmul.msk.f32.vlgmr.msra.gmra.mxu0 %vm57_vm1, %v1715_v5 }
   0x7   :  { %178 = vmatpush.msra.mxu3 %v1734_v9  ;;  %384 = vmatpush.msra.mxu2 %v1734_v9 }
   0x8   :  { %143 = vmatpush.msrb.mxu0 %v120_v14 }
   0x9   :  { %179 = vmatpush.msra.mxu3 %v1749_v12  ;;  %385 = vmatpush.msra.mxu2 %v1749_v12 }
   0xa   :  { %144 = vmatpush.msrb.mxu0 %v119_v15  ;;  %v86_v15 = vld [vmem:[%s2173_s4] sm:$0xf] }
   0xb   :  { %452 = vmatpush.msrb.mxu3 %v1722_v7  ;;  %1460 = vmatpush.msk.msra.mxu1 %vm61_vm0, %v86_v15 }
   0xc   :  { %145 = vmatpush.msrb.mxu0 %v118_v16  ;;  %1461 = vmatmul.msk.f32.vlgmr.msra.gmra.mxu1 %vm57_vm1, %v1715_v5 }
   0xd   :  { %453 = vmatpush.msrb.mxu3 %v1727_v8  ;;  %312 = vmatpush.msrb.mxu1 %v1722_v7 }
   0xe   :  { %242 = vmatpush.msra.mxu0 %v1722_v7 }
   0xf   :  { %454 = vmatpush.msrb.mxu3 %v1734_v9  ;;  %313 = vmatpush.msrb.mxu1 %v1727_v8 }
  0x10   :  { %243 = vmatpush.msra.mxu0 %v1727_v8 }
  0x11   :  { %455 = vmatpush.msrb.mxu3 %v1749_v12  ;;  %314 = vmatpush.msrb.mxu1 %v1734_v9 }
  0x12   :  { %244 = vmatpush.msra.mxu0 %v1734_v9 }
  0x13   :  { %315 = vmatpush.msrb.mxu1 %v1749_v12 }
  0x14   :  { %245 = vmatpush.msra.mxu0 %v1749_v12 }
  0x83   :  { %v1740_v10 = vpop.f32.mrf.mxu0 }
  0x84   :  { %155 = vrot.lane.b32.xlu0 %v1740_v10, %s1627_s21 }
  0x8c   :  { %113 = vperm.xlu0 %1510, %v111_v11  }
  0xf6   :  { %v156_v17 = vpop.permute.xlu0 %155 }
  0xf7   :  { %v159_v18 = vsel %vm158_vm3, 0.0, %v156_v17 }
  0xf8   :  { %1465 = vmatmul.msk.f32.vlgmr.msra.gmra.mxu3 %vm160_vm4, %v159_v18 }
  0xfe   :  { %v114_v19 = vpop.permute.xlu0 %113 }
  0xff   :  { %vm115_vm5 = vcmp.eq.s32.totalorder %v51_v3, %v114_v19 }
 0x100   :  { %v1776_v20 = vsel %vm115_vm5, 1.0, %v1625_v4 }
 0x101   :  { %v123_v21 = vrot.slane %v1776_v20, 1 }
 0x103   :  { %1464 = vmatmul.msk.f32.vlgmr.msrb.gmra.mxu0 %vm124_vm6, %v123_v21 }
 0x104   :  { %522 = vmatpush.msrb.mxu0 %v1722_v7 }
 0x106   :  { %523 = vmatpush.msrb.mxu0 %v1727_v8 }
 0x108   :  { %524 = vmatpush.msrb.mxu0 %v1734_v9 }
 0x10a   :  { %525 = vmatpush.msrb.mxu0 %v1749_v12 }
 0x17b   :  { %v181_v22 = vpop.f32.mrf.mxu3 }
 0x180   :  { %v1786_v23 = vpop.f32.mrf.mxu0 }
 0x181   :  { %v184_v24 = vadd.f32 %v181_v22, %v1786_v23  ;;  %v1811_v22 = vpop.f32.mrf.mxu1 }
 0x183   :  { %1511 = vtanh.f32 %v184_v24  ;;  %v1466_v26 = vmul.f32 -1.442695, %v184_v24 }
 0x185   :  { %1513 = vpow2.f32 %v1466_v26 }
 0x189   :  { %v1512_v25 = vpop.eup %1511 }
 0x18a   :  { %210 = vrot.lane.b32.xlu1 %v1512_v25, %s1628_s5 }
 0x18b   :  { %v1514_v27 = vpop.eup %1513 }
 0x18c   :  { %v188_v28 = vadd.f32 1.0, %v1514_v27 }
 0x18e   :  { %1515 = vrcp.f32 %v188_v28  ;;  %v200_v34 = vand.u32 2147483648, %v188_v28  ;;  %vm194_vm8 = vweird.f32 %v188_v28  ;;  %v198_v35 = vand.u32 2147483647, %v188_v28 }
 0x190   :  { %v201_v37 = vor.u32 1.1754944e-38, %v200_v34  ;;  %vm199_vm10 = vcmp.eq.f32.partialorder %v198_v35, 8.507059e+37 }
 0x192   :  { %205 = vrot.lane.b32.xlu1 %v159_v18, %s1629_s16 }
 0x194   :  { %v1516_v29 = vpop.eup %1515 }
 0x195   :  { %v190_v30 = vmul.f32 %v1516_v29, %v188_v28  ;;  %vm195_vm7 = vweird.f32 %v1516_v29 }
 0x196   :  { %vm196_vm9 = vmor %vm194_vm8, %vm195_vm7 }
 0x197   :  { %v191_v31 = vsub.f32 1.0, %v190_v30 }
 0x199   :  { %v192_v32 = vmul.f32 %v1516_v29, %v191_v31 }
 0x19b   :  { %v193_v33 = vadd.f32 %v1516_v29, %v192_v32 }
 0x19d   :  { %v197_v36 = vsel %vm196_vm9, %v1516_v29, %v193_v33 }
 0x19e   :  { %v202_v39 = vsel %vm199_vm10, %v201_v37, %v197_v36 }
 0x1fc   :  { %v211_v38 = vpop.permute.xlu1 %210 }
 0x1fd   :  { %v213_v40 = vmul.f32 %v211_v38, %v202_v39 }
 0x1ff   :  { %215 = vrot.lane.b32.xlu2 %v213_v40, %s1629_s16 }
 0x204   :  { %v206_v41 = vpop.permute.xlu1 %205 }
 0x205   :  { %v208_v42 = vmul.f32 %v206_v41, %v202_v39 }
 0x259   :  { %v216_v43 = vpop.permute.xlu2 %215 }
 0x25a   :  { %v218_v44 = vadd.f32 %v216_v43, %v208_v42 }
 0x25c   :  { %1517 = vtanh.f32 %v218_v44  ;;  %v275_v4 = vrot.slane %v218_v44, 7 }
 0x262   :  { %v1518_v45 = vpop.eup %1517 }
 0x263   :  { %221 = vrot.lane.b32.xlu2 %v1518_v45, %s1628_s5 }
 0x2bd   :  { %v222_v46 = vpop.permute.xlu2 %221 }
 0x2be   :  { %v224_v47 = vmul.f32 %v222_v46, %v202_v39  ;;  %v663_v46 = vld [vmem:[%s2174_s9 + $0x18] sm:$0xf] }
 0x2bf   :  { %1479 = vmatpush.msk.msrb.mxu2 %vm61_vm0, %v663_v46 }
 0x2c0   :  { %226 = vrot.lane.b32.xlu1 %v224_v47, %s1629_s16  ;;  %v662_v47 = vld [vmem:[%s2174_s9 + $0x10] sm:$0xff] }
 0x2c1   :  { %682 = vmatpush.msrb.mxu2 %v662_v47 }
 0x332   :  { %v227_v48 = vpop.permute.xlu1 %226 }
 0x333   :  { %1467 = vmatmul.msk.f32.vlgmr.msra.gmra.mxu0 %vm160_vm4, %v227_v48  ;;  %v661_v48 = vld [vmem:[%s2174_s9 + $0x8] sm:$0xff] }
 0x334   :  { %683 = vmatpush.msrb.mxu2 %v661_v48 }
 0x3b0   :  { %v247_v49 = vpop.f32.mrf.mxu0 }
 0x3b1   :  { %v251_v50 = vrot.slane %v247_v49, 7  ;;  %v660_v49 = vld [vmem:[%s2174_s9] sm:$0xff]  ;;  %s1630_s9 = smov 16  }
 0x3b2   :  { %684 = vmatpush.msrb.mxu2 %v660_v49 }
 0x3b3   :  { %v253_v51 = vadd.f32 %v251_v50, %v1786_v23 }
 0x3b5   :  { %1519 = vtanh.f32 %v253_v51  ;;  %v1468_v53 = vmul.f32 -1.442695, %v253_v51 }
 0x3b7   :  { %1521 = vpow2.f32 %v1468_v53 }
 0x3bb   :  { %v1520_v52 = vpop.eup %1519 }
 0x3bc   :  { %279 = vrot.lane.b32.xlu2 %v1520_v52, %s1628_s5 }
 0x3bd   :  { %v1522_v54 = vpop.eup %1521 }
 0x3be   :  { %v257_v55 = vadd.f32 1.0, %v1522_v54 }
 0x3c0   :  { %1523 = vrcp.f32 %v257_v55  ;;  %v269_v61 = vand.u32 2147483648, %v257_v55  ;;  %vm263_vm12 = vweird.f32 %v257_v55  ;;  %v267_v62 = vand.u32 2147483647, %v257_v55 }
 0x3c2   :  { %v270_v0 = vor.u32 1.1754944e-38, %v269_v61  ;;  %vm268_vm14 = vcmp.eq.f32.partialorder %v267_v62, 8.507059e+37 }
 0x3c6   :  { %v1524_v56 = vpop.eup %1523 }
 0x3c7   :  { %v259_v57 = vmul.f32 %v1524_v56, %v257_v55  ;;  %vm264_vm11 = vweird.f32 %v1524_v56 }
 0x3c8   :  { %vm265_vm13 = vmor %vm263_vm12, %vm264_vm11 }
 0x3c9   :  { %v260_v58 = vsub.f32 1.0, %v259_v57 }
 0x3cb   :  { %v261_v59 = vmul.f32 %v1524_v56, %v260_v58 }
 0x3cd   :  { %v262_v60 = vadd.f32 %v1524_v56, %v261_v59 }
 0x3cf   :  { %v266_v63 = vsel %vm265_vm13, %v1524_v56, %v262_v60 }
 0x3d0   :  { %v271_v2 = vsel %vm268_vm14, %v270_v0, %v266_v63 }
 0x3d1   :  { %v277_v6 = vmul.f32 %v275_v4, %v271_v2 }
 0x416   :  { %v280_v1 = vpop.permute.xlu2 %279 }
 0x417   :  { %v282_v3 = vmul.f32 %v280_v1, %v271_v2 }
 0x419   :  { %284 = vrot.lane.b32.xlu0 %v282_v3, %s1629_s16 }
 0x48b   :  { %v285_v11 = vpop.permute.xlu0 %284 }
 0x48c   :  { %v287_v13 = vadd.f32 %v285_v11, %v277_v6 }
 0x48e   :  { %1525 = vtanh.f32 %v287_v13  ;;  %v345_v38 = vrot.slane %v287_v13, 7 }
 0x494   :  { %v1526_v14 = vpop.eup %1525 }
 0x495   :  { %290 = vrot.lane.b32.xlu1 %v1526_v14, %s1628_s5 }
 0x507   :  { %v291_v16 = vpop.permute.xlu1 %290 }
 0x508   :  { %v293_v17 = vmul.f32 %v291_v16, %v271_v2 }
 0x50a   :  { %v295_v18 = vrot.slane %v293_v17, 1 }
 0x50c   :  { %296 = vrot.lane.b32.xlu2 %v295_v18, %s1629_s16 }
 0x566   :  { %v297_v19 = vpop.permute.xlu2 %296 }
 0x567   :  { %1469 = vmatmul.msk.f32.vlgmr.msrb.gmra.mxu1 %vm160_vm4, %v297_v19 }
 0x5e4   :  { %v317_v24 = vpop.f32.mrf.mxu1 }
 0x5e5   :  { %v321_v5 = vrot.slane %v317_v24, 6 }
 0x5e7   :  { %v323_v7 = vadd.f32 %v321_v5, %v1786_v23 }
 0x5e9   :  { %1527 = vtanh.f32 %v323_v7  ;;  %v1470_v9 = vmul.f32 -1.442695, %v323_v7 }
 0x5eb   :  { %1529 = vpow2.f32 %v1470_v9 }
 0x5ef   :  { %v1528_v8 = vpop.eup %1527 }
 0x5f0   :  { %349 = vrot.lane.b32.xlu0 %v1528_v8, %s1628_s5 }
 0x5f1   :  { %v1530_v12 = vpop.eup %1529 }
 0x5f2   :  { %v327_v25 = vadd.f32 1.0, %v1530_v12 }
 0x5f4   :  { %1531 = vrcp.f32 %v327_v25  ;;  %v339_v31 = vand.u32 2147483648, %v327_v25  ;;  %vm333_vm1 = vweird.f32 %v327_v25  ;;  %v337_v32 = vand.u32 2147483647, %v327_v25 }
 0x5f6   :  { %v340_v34 = vor.u32 1.1754944e-38, %v339_v31  ;;  %vm338_vm5 = vcmp.eq.f32.partialorder %v337_v32, 8.507059e+37 }
 0x5fa   :  { %v1532_v26 = vpop.eup %1531 }
 0x5fb   :  { %v329_v27 = vmul.f32 %v1532_v26, %v327_v25  ;;  %vm334_vm15 = vweird.f32 %v1532_v26 }
 0x5fc   :  { %vm335_vm2 = vmor %vm333_vm1, %vm334_vm15 }
 0x5fd   :  { %v330_v28 = vsub.f32 1.0, %v329_v27 }
 0x5ff   :  { %v331_v29 = vmul.f32 %v1532_v26, %v330_v28 }
 0x601   :  { %v332_v30 = vadd.f32 %v1532_v26, %v331_v29 }
 0x603   :  { %v336_v33 = vsel %vm335_vm2, %v1532_v26, %v332_v30  ;;  %vm590_vm2 = vcmask 523264  }
 0x604   :  { %v341_v36 = vsel %vm338_vm5, %v340_v34, %v336_v33 }
 0x605   :  { %v347_v39 = vmul.f32 %v345_v38, %v341_v36 }
 0x662   :  { %v350_v35 = vpop.permute.xlu0 %349 }
 0x663   :  { %v352_v37 = vmul.f32 %v350_v35, %v341_v36 }
 0x665   :  { %354 = vrot.lane.b32.xlu1 %v352_v37, %s1629_s16 }
 0x6d7   :  { %v355_v40 = vpop.permute.xlu1 %354 }
 0x6d8   :  { %v357_v41 = vadd.f32 %v355_v40, %v347_v39 }
 0x6da   :  { %1533 = vtanh.f32 %v357_v41  ;;  %v415_v11 = vrot.slane %v357_v41, 7 }
 0x6e0   :  { %v1534_v42 = vpop.eup %1533 }
 0x6e1   :  { %360 = vrot.lane.b32.xlu2 %v1534_v42, %s1628_s5 }
 0x73b   :  { %v361_v43 = vpop.permute.xlu2 %360 }
 0x73c   :  { %v363_v44 = vmul.f32 %v361_v43, %v341_v36 }
 0x73e   :  { %v365_v45 = vrot.slane %v363_v44, 2 }
 0x740   :  { %366 = vrot.lane.b32.xlu0 %v365_v45, %s1629_s16 }
 0x7b2   :  { %v367_v50 = vpop.permute.xlu0 %366 }
 0x7b3   :  { %1471 = vmatmul.msk.f32.vlgmr.msra.gmra.mxu2 %vm160_vm4, %v367_v50 }
 0x7bb   :  { %1480 = vmatmul.msk.f32.vlgmr.msrb.gmra.mxu2 %vm124_vm6, %v1776_v20  ;;  %v1632_v20 = vmov 7.0  }
 0x836   :  { %v387_v51 = vpop.f32.mrf.mxu2 }
 0x837   :  { %v391_v52 = vrot.slane %v387_v51, 5 }
 0x839   :  { %v393_v53 = vadd.f32 %v391_v52, %v1786_v23 }
 0x83b   :  { %1535 = vtanh.f32 %v393_v53  ;;  %v1472_v55 = vmul.f32 -1.442695, %v393_v53 }
 0x83d   :  { %1537 = vpow2.f32 %v1472_v55 }
 0x841   :  { %v1536_v54 = vpop.eup %1535 }
 0x842   :  { %419 = vrot.lane.b32.xlu1 %v1536_v54, %s1628_s5 }
 0x843   :  { %v1538_v56 = vpop.eup %1537 }
 0x844   :  { %v397_v57 = vadd.f32 1.0, %v1538_v56 }
 0x846   :  { %1539 = vrcp.f32 %v397_v57  ;;  %v409_v63 = vand.u32 2147483648, %v397_v57  ;;  %vm403_vm6 = vweird.f32 %v397_v57  ;;  %v407_v0 = vand.u32 2147483647, %v397_v57 }
 0x848   :  { %v410_v2 = vor.u32 1.1754944e-38, %v409_v63  ;;  %vm408_vm8 = vcmp.eq.f32.partialorder %v407_v0, 8.507059e+37 }
 0x84c   :  { %v1540_v58 = vpop.eup %1539 }
 0x84d   :  { %v399_v59 = vmul.f32 %v1540_v58, %v397_v57  ;;  %vm404_vm0 = vweird.f32 %v1540_v58 }
 0x84e   :  { %vm405_vm7 = vmor %vm403_vm6, %vm404_vm0 }
 0x84f   :  { %v400_v60 = vsub.f32 1.0, %v399_v59 }
 0x851   :  { %v401_v61 = vmul.f32 %v1540_v58, %v400_v60 }
 0x853   :  { %v402_v62 = vadd.f32 %v1540_v58, %v401_v61 }
 0x855   :  { %v406_v1 = vsel %vm405_vm7, %v1540_v58, %v402_v62 }
 0x856   :  { %v411_v4 = vsel %vm408_vm8, %v410_v2, %v406_v1 }
 0x857   :  { %v417_v13 = vmul.f32 %v415_v11, %v411_v4 }
 0x8b4   :  { %v420_v3 = vpop.permute.xlu1 %419 }
 0x8b5   :  { %v422_v6 = vmul.f32 %v420_v3, %v411_v4 }
 0x8b7   :  { %424 = vrot.lane.b32.xlu2 %v422_v6, %s1629_s16 }
 0x911   :  { %v425_v14 = vpop.permute.xlu2 %424 }
 0x912   :  { %v427_v15 = vadd.f32 %v425_v14, %v417_v13  ;;  %v705_v13 = vrot.slane %v1740_v10, 7  ;;  %v586_v14 = vld [vmem:[%s2175_s7 + $0x38] sm:$0xff] }
 0x913   :  { %601 = vmatpush.msra.mxu1 %v586_v14 }
 0x914   :  { %1541 = vtanh.f32 %v427_v15  ;;  %v485_v39 = vrot.slane %v427_v15, 7  ;;  %v585_v15 = vld [vmem:[%s2175_s7 + $0x30] sm:$0xff] }
 0x915   :  { %602 = vmatpush.msra.mxu1 %v585_v15  ;;  %v1938_v15 = vld [vmem:[%s2179_s11 + $0x38] sm:$0xff] }
 0x916   :  { %792 = vmatpush.msra.mxu0 %v1938_v15 }
 0x91a   :  { %v1542_v16 = vpop.eup %1541 }
 0x91b   :  { %430 = vrot.lane.b32.xlu0 %v1542_v16, %s1628_s5  ;;  %v584_v16 = vld [vmem:[%s2175_s7 + $0x28] sm:$0xff] }
 0x91c   :  { %603 = vmatpush.msra.mxu1 %v584_v16  ;;  %v1943_v16 = vld [vmem:[%s2179_s11 + $0x30] sm:$0xff] }
 0x91d   :  { %793 = vmatpush.msra.mxu0 %v1943_v16 }
 0x98d   :  { %v431_v17 = vpop.permute.xlu0 %430 }
 0x98e   :  { %v433_v18 = vmul.f32 %v431_v17, %v411_v4  ;;  %v583_v17 = vld [vmem:[%s2175_s7 + $0x20] sm:$0xff] }
 0x98f   :  { %604 = vmatpush.msra.mxu1 %v583_v17  ;;  %v1950_v17 = vld [vmem:[%s2179_s11 + $0x28] sm:$0xff] }
 0x990   :  { %v435_v19 = vrot.slane %v433_v18, 3  ;;  %v581_v18 = vld [vmem:[%s2175_s7 + $0x10] sm:$0xff]  ;;  %794 = vmatpush.msra.mxu0 %v1950_v17 }
 0x992   :  { %436 = vrot.lane.b32.xlu1 %v435_v19, %s1629_s16 }
 0xa04   :  { %v437_v24 = vpop.permute.xlu1 %436 }
 0xa05   :  { %1473 = vmatmul.msk.f32.vlgmr.msrb.gmra.mxu3 %vm160_vm4, %v437_v24 }
 0xa88   :  { %v457_v5 = vpop.f32.mrf.mxu3 }
 0xa89   :  { %v461_v7 = vrot.slane %v457_v5, 4  ;;  %v580_v5 = vld [vmem:[%s2175_s7 + $0x8] sm:$0xff] }
 0xa8b   :  { %v463_v8 = vadd.f32 %v461_v7, %v1786_v23  ;;  %v579_v7 = vld [vmem:[%s2175_s7] sm:$0xff] }
 0xa8d   :  { %1543 = vtanh.f32 %v463_v8  ;;  %v1474_v12 = vmul.f32 -1.442695, %v463_v8 }
 0xa8f   :  { %1545 = vpow2.f32 %v1474_v12 }
 0xa93   :  { %v1544_v9 = vpop.eup %1543 }
 0xa94   :  { %489 = vrot.lane.b32.xlu2 %v1544_v9, %s1628_s5 }
 0xa95   :  { %v1546_v25 = vpop.eup %1545 }
 0xa96   :  { %v467_v26 = vadd.f32 1.0, %v1546_v25  ;;  %v1882_v25 = vld [vmem:[%s2176_s10 + $0x18] sm:$0xff] }
 0xa97   :  { %725 = vmatpush.msra.mxu3 %v1882_v25  ;;  %824 = vmatpush.msra.mxu2 %v1882_v25 }
 0xa98   :  { %1547 = vrcp.f32 %v467_v26  ;;  %v479_v32 = vand.u32 2147483648, %v467_v26  ;;  %vm473_vm10 = vweird.f32 %v467_v26  ;;  %v477_v33 = vand.u32 2147483647, %v467_v26 }
 0xa9a   :  { %v480_v35 = vor.u32 1.1754944e-38, %v479_v32  ;;  %vm478_vm12 = vcmp.eq.f32.partialorder %v477_v33, 8.507059e+37 }
 0xa9e   :  { %v1548_v27 = vpop.eup %1547 }
 0xa9f   :  { %v469_v28 = vmul.f32 %v1548_v27, %v467_v26  ;;  %vm474_vm9 = vweird.f32 %v1548_v27  ;;  %v1887_v26 = vld [vmem:[%s2176_s10 + $0x10] sm:$0xff] }
 0xaa0   :  { %vm475_vm11 = vmor %vm473_vm10, %vm474_vm9  ;;  %726 = vmatpush.msra.mxu3 %v1887_v26  ;;  %825 = vmatpush.msra.mxu2 %v1887_v26 }
 0xaa1   :  { %v470_v29 = vsub.f32 1.0, %v469_v28 }
 0xaa3   :  { %v471_v30 = vmul.f32 %v1548_v27, %v470_v29 }
 0xaa5   :  { %v472_v31 = vadd.f32 %v1548_v27, %v471_v30 }
 0xaa7   :  { %v476_v34 = vsel %vm475_vm11, %v1548_v27, %v472_v31  ;;  %v587_v27 = vld [vmem:[%s2177_s8] sm:$0x1] }
 0xaa8   :  { %v481_v37 = vsel %vm478_vm12, %v480_v35, %v476_v34  ;;  %v1908_v35 = vld [vmem:[%s2176_s10 + $0x8] sm:$0xff] }
 0xaa9   :  { %v487_v40 = vmul.f32 %v485_v39, %v481_v37  ;;  %727 = vmatpush.msra.mxu3 %v1908_v35  ;;  %826 = vmatpush.msra.mxu2 %v1908_v35 }
 0xaee   :  { %v490_v36 = vpop.permute.xlu2 %489 }
 0xaef   :  { %v492_v38 = vmul.f32 %v490_v36, %v481_v37  ;;  %v1914_v36 = vld [vmem:[%s2176_s10] sm:$0xff] }
 0xaf0   :  { %728 = vmatpush.msra.mxu3 %v1914_v36  ;;  %827 = vmatpush.msra.mxu2 %v1914_v36 }
 0xaf1   :  { %494 = vrot.lane.b32.xlu0 %v492_v38, %s1629_s16 }
 0xaf2   :  { %892 = vmatpush.msrb.mxu3 %v1938_v15  ;;  %991 = vmatpush.msrb.mxu2 %v1938_v15 }
 0xaf4   :  { %893 = vmatpush.msrb.mxu3 %v1943_v16  ;;  %992 = vmatpush.msrb.mxu2 %v1943_v16 }
 0xaf6   :  { %894 = vmatpush.msrb.mxu3 %v1950_v17  ;;  %993 = vmatpush.msrb.mxu2 %v1950_v17 }
 0xb63   :  { %v495_v41 = vpop.permute.xlu0 %494 }
 0xb64   :  { %v497_v42 = vadd.f32 %v495_v41, %v487_v40 }
 0xb66   :  { %1549 = vtanh.f32 %v497_v42  ;;  %v555_v2 = vrot.slane %v497_v42, 7 }
 0xb6c   :  { %v1550_v43 = vpop.eup %1549 }
 0xb6d   :  { %500 = vrot.lane.b32.xlu1 %v1550_v43, %s1628_s5 }
 0xbdf   :  { %v501_v44 = vpop.permute.xlu1 %500 }
 0xbe0   :  { %v503_v45 = vmul.f32 %v501_v44, %v481_v37  ;;  %v613_v37 = vld [vmem:[%s2178_s13] sm:$0x3] }
 0xbe2   :  { %v505_v46 = vrot.slane %v503_v45, 4 }
 0xbe4   :  { %506 = vrot.lane.b32.xlu2 %v505_v46, %s1629_s16 }
 0xc3e   :  { %v507_v47 = vpop.permute.xlu2 %506 }
 0xc3f   :  { %1475 = vmatmul.msk.f32.vlgmr.msrb.gmra.mxu0 %vm160_vm4, %v507_v47 }
 0xcbc   :  { %v527_v48 = vpop.f32.mrf.mxu0 }
 0xcbd   :  { %v531_v49 = vrot.slane %v527_v48, 3 }
 0xcbf   :  { %v533_v50 = vadd.f32 %v531_v49, %v1786_v23 }
 0xcc1   :  { %1551 = vtanh.f32 %v533_v50  ;;  %v1476_v52 = vmul.f32 -1.442695, %v533_v50  ;;  %v1929_v50 = vpop.f32.mrf.mxu2 }
 0xcc3   :  { %1553 = vpow2.f32 %v1476_v52 }
 0xcc7   :  { %v1552_v51 = vpop.eup %1551 }
 0xcc8   :  { %559 = vrot.lane.b32.xlu0 %v1552_v51, %s1628_s5 }
 0xcc9   :  { %v1554_v53 = vpop.eup %1553 }
 0xcca   :  { %v537_v54 = vadd.f32 1.0, %v1554_v53 }
 0xccc   :  { %1555 = vrcp.f32 %v537_v54  ;;  %v549_v60 = vand.u32 2147483648, %v537_v54  ;;  %vm543_vm14 = vweird.f32 %v537_v54  ;;  %v547_v61 = vand.u32 2147483647, %v537_v54 }
 0xcce   :  { %v550_v62 = vor.u32 1.1754944e-38, %v549_v60  ;;  %vm548_vm1 = vcmp.eq.f32.partialorder %v547_v61, 8.507059e+37 }
 0xcd2   :  { %v1556_v55 = vpop.eup %1555 }
 0xcd3   :  { %v539_v56 = vmul.f32 %v1556_v55, %v537_v54  ;;  %vm544_vm13 = vweird.f32 %v1556_v55 }
 0xcd4   :  { %vm545_vm15 = vmor %vm543_vm14, %vm544_vm13 }
 0xcd5   :  { %v540_v57 = vsub.f32 1.0, %v539_v56 }
 0xcd7   :  { %v541_v58 = vmul.f32 %v1556_v55, %v540_v57 }
 0xcd9   :  { %v542_v59 = vadd.f32 %v1556_v55, %v541_v58 }
 0xcdb   :  { %v546_v23 = vsel %vm545_vm15, %v1556_v55, %v542_v59 }
 0xcdc   :  { %v551_v0 = vsel %vm548_vm1, %v550_v62, %v546_v23 }
 0xcdd   :  { %v557_v3 = vmul.f32 %v555_v2, %v551_v0 }
 0xd3a   :  { %v560_v63 = vpop.permute.xlu0 %559 }
 0xd3b   :  { %v562_v1 = vmul.f32 %v560_v63, %v551_v0 }
 0xd3d   :  { %564 = vrot.lane.b32.xlu1 %v562_v1, %s1629_s16 }
 0xdaf   :  { %v565_v4 = vpop.permute.xlu1 %564 }
 0xdb0   :  { %v567_v6 = vadd.f32 %v565_v4, %v557_v3 }
 0xdb2   :  { %1557 = vtanh.f32 %v567_v6 }
 0xdb8   :  { %v1558_v11 = vpop.eup %1557 }
 0xdb9   :  { %570 = vrot.lane.b32.xlu2 %v1558_v11, %s1628_s5 }
 0xdc1   :  { %701 = vrot.lane.b32.xlu2 %v1740_v10, %s1630_s9  ;;  %v582_v10 = vld [vmem:[%s2175_s7 + $0x18] sm:$0xff] }
 0xdc2   :  { %605 = vmatpush.msra.mxu1 %v582_v10  ;;  %v1959_v10 = vld [vmem:[%s2179_s11 + $0x20] sm:$0xff] }
 0xdc3   :  { %795 = vmatpush.msra.mxu0 %v1959_v10  ;;  %895 = vmatpush.msrb.mxu3 %v1959_v10 }
 0xdc4   :  { %606 = vmatpush.msra.mxu1 %v581_v18  ;;  %v1968_v18 = vld [vmem:[%s2179_s11 + $0x18] sm:$0xff]  ;;  %994 = vmatpush.msrb.mxu2 %v1959_v10 }
 0xdc5   :  { %796 = vmatpush.msra.mxu0 %v1968_v18  ;;  %896 = vmatpush.msrb.mxu3 %v1968_v18 }
 0xdc6   :  { %607 = vmatpush.msra.mxu1 %v580_v5  ;;  %995 = vmatpush.msrb.mxu2 %v1968_v18 }
 0xdc8   :  { %608 = vmatpush.msra.mxu1 %v579_v7 }
 0xdc9   :  { %706 = vrot.lane.b32.xlu2 %v705_v13, %s1630_s9 }
 0xdca   :  { %923 = vmatpush.msrb.mxu1 %v1882_v25 }
 0xdcc   :  { %924 = vmatpush.msrb.mxu1 %v1887_v26 }
 0xdce   :  { %925 = vmatpush.msrb.mxu1 %v1908_v35 }
 0xdd0   :  { %926 = vmatpush.msrb.mxu1 %v1914_v36 }
 0xe13   :  { %v571_v19 = vpop.permute.xlu2 %570 }
 0xe14   :  { %v573_v24 = vmul.f32 %v571_v19, %v551_v0  ;;  %v1977_v19 = vld [vmem:[%s2179_s11 + $0x10] sm:$0xff] }
 0xe15   :  { %797 = vmatpush.msra.mxu0 %v1977_v19  ;;  %897 = vmatpush.msrb.mxu3 %v1977_v19 }
 0xe16   :  { %575 = vrot.lane.b32.xlu0 %v573_v24, %s1629_s16  ;;  %v1986_v24 = vld [vmem:[%s2179_s11 + $0x8] sm:$0xff]  ;;  %996 = vmatpush.msrb.mxu2 %v1977_v19 }
 0xe17   :  { %798 = vmatpush.msra.mxu0 %v1986_v24  ;;  %898 = vmatpush.msrb.mxu3 %v1986_v24 }
 0xe18   :  { %997 = vmatpush.msrb.mxu2 %v1986_v24 }
 0xe1b   :  { %v702_v38 = vpop.permute.xlu2 %701 }
 0xe23   :  { %v707_v47 = vpop.permute.xlu2 %706 }
 0xe88   :  { %v576_v8 = vpop.permute.xlu0 %575 }
 0xe89   :  { %v578_v9 = vsel %vm160_vm4, %v576_v8, %v567_v6  ;;  %v2002_v8 = vld [vmem:[%s2179_s11] sm:$0xff] }
 0xe8a   :  { %v589_v12 = vrot.slane %v578_v9, 5  ;;  %799 = vmatpush.msra.mxu0 %v2002_v8  ;;  %899 = vmatpush.msrb.mxu3 %v2002_v8 }
 0xe8b   :  { %998 = vmatpush.msrb.mxu2 %v2002_v8 }
 0xe8c   :  { %1477 = vmatmul.msk.f32.vlgmr.msra.gmra.mxu1 %vm590_vm2, %v589_v12  ;;  %1022 = vmatpush.msrb.mxu0 %v1882_v25 }
 0xe8d   :  { %1090 = vmatpush.msra.mxu1 %v1938_v15 }
 0xe8e   :  { %1023 = vmatpush.msrb.mxu0 %v1887_v26 }
 0xe8f   :  { %1091 = vmatpush.msra.mxu1 %v1943_v16 }
 0xe90   :  { %1024 = vmatpush.msrb.mxu0 %v1908_v35 }
 0xe91   :  { %1092 = vmatpush.msra.mxu1 %v1950_v17 }
 0xe92   :  { %1025 = vmatpush.msrb.mxu0 %v1914_v36 }
 0xe93   :  { %1093 = vmatpush.msra.mxu1 %v1959_v10 }
 0xe95   :  { %1094 = vmatpush.msra.mxu1 %v1968_v18 }
 0xe97   :  { %1095 = vmatpush.msra.mxu1 %v1977_v19 }
 0xe99   :  { %1096 = vmatpush.msra.mxu1 %v1986_v24 }
 0xe9b   :  { %1097 = vmatpush.msra.mxu1 %v2002_v8 }
 0xf09   :  { %v610_v28 = vpop.f32.mrf.mxu1 }
 0xf0a   :  { %v1898_v29 = vadd.f32 %v610_v28, %v587_v27  ;;  %v85_v27 = vld [vmem:[%s2180_s12] sm:$0x1] }
 0xf0b   :  { %v2030_v28 = vadd.f32 %v1811_v22, %v85_v27 }
 0xf0c   :  { %v614_v30 = vmul.f32 0.5, %v1898_v29  ;;  %v629_v34 = vrot.slane %v1898_v29, 7 }
 0xf0e   :  { %v615_v31 = vmul.f32 1.442695, %v614_v30 }
 0xf10   :  { %1559 = vpow2.f32 %v615_v31 }
 0xf16   :  { %v1560_v32 = vpop.eup %1559 }
 0xf17   :  { %618 = vrot.lane.b32.xlu1 %v1560_v32, %s1631_s24  ;;  %v623_v33 = vrot.slane %v1560_v32, 7 }
 0xf19   :  { %624 = vrot.lane.b32.xlu0 %v623_v33, %s1629_s16 }
 0xf1f   :  { %630 = vrot.lane.b32.xlu1 %v629_v34, %s1628_s5 }
 0xf89   :  { %v619_v39 = vpop.permute.xlu1 %618 }
 0xf8a   :  { %v621_v40 = vmul.f32 %v619_v39, %v613_v37 }
 0xf8b   :  { %v625_v42 = vpop.permute.xlu0 %624 }
 0xf8c   :  { %v622_v41 = vadd.f32 %v621_v40, %v1898_v29  ;;  %v627_v44 = vmul.f32 %v625_v42, %v613_v37 }
 0xf8e   :  { %v704_v43 = vsel %vm158_vm3, %v622_v41, %v702_v38 }
 0xf8f   :  { %1481 = vmatmul.msk.f32.vlgmr.msra.gmra.mxu3 %vm160_vm4, %v704_v43 }
 0xf90   :  { %1121 = vmatpush.msra.mxu3 %v1882_v25 }
 0xf91   :  { %v631_v45 = vpop.permute.xlu1 %630 }
 0xf92   :  { %v633_v46 = vadd.f32 %v631_v45, %v627_v44  ;;  %1122 = vmatpush.msra.mxu3 %v1887_v26 }
 0xf94   :  { %v709_v48 = vsel %vm158_vm3, %v633_v46, %v707_v47  ;;  %1123 = vmatpush.msra.mxu3 %v1908_v35 }
 0xf95   :  { %v755_v49 = vrot.slane %v709_v48, 1 }
 0xf96   :  { %1124 = vmatpush.msra.mxu3 %v1914_v36 }
 0xf97   :  { %756 = vrot.lane.b32.xlu1 %v755_v49, %s1629_s16 }
0x1009   :  { %v757_v4 = vpop.permute.xlu1 %756 }
0x1012   :  { %v730_v51 = vpop.f32.mrf.mxu3 }
0x1013   :  { %v733_v52 = vadd.f32 %v730_v51, %v1929_v50 }
0x1015   :  { %1561 = vtanh.f32 %v733_v52  ;;  %v1482_v54 = vmul.f32 -1.442695, %v733_v52 }
0x1017   :  { %1563 = vpow2.f32 %v1482_v54 }
0x101b   :  { %v1562_v53 = vpop.eup %1561 }
0x101c   :  { %761 = vrot.lane.b32.xlu0 %v1562_v53, %s1628_s5 }
0x101d   :  { %v1564_v55 = vpop.eup %1563 }
0x101e   :  { %v737_v56 = vadd.f32 1.0, %v1564_v55 }
0x1020   :  { %1565 = vrcp.f32 %v737_v56  ;;  %v749_v23 = vand.u32 2147483648, %v737_v56  ;;  %vm743_vm5 = vweird.f32 %v737_v56  ;;  %v747_v62 = vand.u32 2147483647, %v737_v56 }
0x1022   :  { %v750_v0 = vor.u32 1.1754944e-38, %v749_v23  ;;  %vm748_vm6 = vcmp.eq.f32.partialorder %v747_v62, 8.507059e+37 }
0x1026   :  { %v1566_v57 = vpop.eup %1565 }
0x1027   :  { %v739_v58 = vmul.f32 %v1566_v57, %v737_v56  ;;  %vm744_vm3 = vweird.f32 %v1566_v57 }
0x1028   :  { %vm745_vm0 = vmor %vm743_vm5, %vm744_vm3 }
0x1029   :  { %v740_v59 = vsub.f32 1.0, %v739_v58 }
0x102b   :  { %v741_v60 = vmul.f32 %v1566_v57, %v740_v59 }
0x102d   :  { %v742_v61 = vadd.f32 %v1566_v57, %v741_v60 }
0x102f   :  { %v746_v63 = vsel %vm745_vm0, %v1566_v57, %v742_v61 }
0x1030   :  { %v751_v2 = vsel %vm748_vm6, %v750_v0, %v746_v63 }
0x1031   :  { %v759_v6 = vmul.f32 %v757_v4, %v751_v2 }
0x108e   :  { %v762_v1 = vpop.permute.xlu0 %761 }
0x108f   :  { %v764_v3 = vmul.f32 %v762_v1, %v751_v2 }
0x1091   :  { %766 = vrot.lane.b32.xlu2 %v764_v3, %s1629_s16 }
0x10eb   :  { %v767_v11 = vpop.permute.xlu2 %766 }
0x10ec   :  { %v769_v13 = vadd.f32 %v767_v11, %v759_v6 }
0x10ee   :  { %1567 = vtanh.f32 %v769_v13 }
0x10f4   :  { %v1568_v14 = vpop.eup %1567 }
0x10f5   :  { %772 = vrot.lane.b32.xlu0 %v1568_v14, %s1628_s5 }
0x1167   :  { %v773_v5 = vpop.permute.xlu0 %772 }
0x1168   :  { %v775_v7 = vmul.f32 %v773_v5, %v751_v2 }
0x116a   :  { %777 = vrot.lane.b32.xlu1 %v775_v7, %s1629_s16 }
0x11dc   :  { %v778_v9 = vpop.permute.xlu1 %777 }
0x11dd   :  { %v780_v12 = vsel %vm160_vm4, %v778_v9, %v769_v13 }
0x11de   :  { %1483 = vmatmul.msk.f32.vlgmr.msra.gmra.mxu0 %vm590_vm2, %v780_v12 }
0x11df   :  { %1189 = vmatpush.msra.mxu0 %v1938_v15 }
0x11e1   :  { %1190 = vmatpush.msra.mxu0 %v1943_v16 }
0x11e3   :  { %1191 = vmatpush.msra.mxu0 %v1950_v17 }
0x11e5   :  { %1192 = vmatpush.msra.mxu0 %v1959_v10 }
0x11e7   :  { %1193 = vmatpush.msra.mxu0 %v1968_v18 }
0x11e9   :  { %1194 = vmatpush.msra.mxu0 %v1977_v19 }
0x11eb   :  { %1195 = vmatpush.msra.mxu0 %v1986_v24 }
0x11ed   :  { %1196 = vmatpush.msra.mxu0 %v2002_v8 }
0x125b   :  { %v801_v30 = vpop.f32.mrf.mxu0 }
0x125c   :  { %v2033_v31 = vadd.f32 %v801_v30, %v2030_v28 }
0x125e   :  { %1484 = vmatmul.msk.f32.vlgmr.msra.gmra.mxu2 %vm160_vm4, %v2033_v31  ;;  %v856_v53 = vrot.slane %v2033_v31, 7 }
0x125f   :  { %1220 = vmatpush.msra.mxu2 %v1882_v25 }
0x1261   :  { %1221 = vmatpush.msra.mxu2 %v1887_v26 }
0x1263   :  { %1222 = vmatpush.msra.mxu2 %v1908_v35 }
0x1265   :  { %1223 = vmatpush.msra.mxu2 %v1914_v36 }
0x12e1   :  { %v829_v32 = vpop.f32.mrf.mxu2 }
0x12e2   :  { %v833_v33 = vrot.slane %v829_v32, 7 }
0x12e4   :  { %v835_v22 = vadd.f32 %v833_v33, %v1929_v50 }
0x12e6   :  { %1569 = vtanh.f32 %v835_v22  ;;  %v1485_v37 = vmul.f32 -1.442695, %v835_v22 }
0x12e8   :  { %1571 = vpow2.f32 %v1485_v37 }
0x12ec   :  { %v1570_v34 = vpop.eup %1569 }
0x12ed   :  { %860 = vrot.lane.b32.xlu2 %v1570_v34, %s1628_s5 }
0x12ee   :  { %v1572_v38 = vpop.eup %1571 }
0x12ef   :  { %v839_v39 = vadd.f32 1.0, %v1572_v38 }
0x12f1   :  { %1573 = vrcp.f32 %v839_v39  ;;  %v851_v45 = vand.u32 2147483648, %v839_v39  ;;  %vm845_vm8 = vweird.f32 %v839_v39  ;;  %v849_v46 = vand.u32 2147483647, %v839_v39 }
0x12f3   :  { %v852_v48 = vor.u32 1.1754944e-38, %v851_v45  ;;  %vm850_vm10 = vcmp.eq.f32.partialorder %v849_v46, 8.507059e+37 }
0x12f7   :  { %v1574_v40 = vpop.eup %1573 }
0x12f8   :  { %v841_v41 = vmul.f32 %v1574_v40, %v839_v39  ;;  %vm846_vm7 = vweird.f32 %v1574_v40 }
0x12f9   :  { %vm847_vm9 = vmor %vm845_vm8, %vm846_vm7 }
0x12fa   :  { %v842_v42 = vsub.f32 1.0, %v841_v41 }
0x12fc   :  { %v843_v43 = vmul.f32 %v1574_v40, %v842_v42 }
0x12fe   :  { %v844_v44 = vadd.f32 %v1574_v40, %v843_v43 }
0x1300   :  { %v848_v47 = vsel %vm847_vm9, %v1574_v40, %v844_v44 }
0x1301   :  { %v853_v51 = vsel %vm850_vm10, %v852_v48, %v848_v47 }
0x1302   :  { %v858_v54 = vmul.f32 %v856_v53, %v853_v51 }
0x1347   :  { %v861_v49 = vpop.permute.xlu2 %860 }
0x1348   :  { %v863_v52 = vmul.f32 %v861_v49, %v853_v51 }
0x134a   :  { %865 = vrot.lane.b32.xlu0 %v863_v52, %s1629_s16 }
0x13bc   :  { %v866_v55 = vpop.permute.xlu0 %865 }
0x13bd   :  { %v868_v56 = vadd.f32 %v866_v55, %v858_v54 }
0x13bf   :  { %1575 = vtanh.f32 %v868_v56 }
0x13c5   :  { %v1576_v57 = vpop.eup %1575 }
0x13c6   :  { %871 = vrot.lane.b32.xlu1 %v1576_v57, %s1628_s5 }
0x1438   :  { %v872_v58 = vpop.permute.xlu1 %871 }
0x1439   :  { %v874_v59 = vmul.f32 %v872_v58, %v853_v51 }
0x143b   :  { %876 = vrot.lane.b32.xlu2 %v874_v59, %s1629_s16 }
0x1495   :  { %v877_v60 = vpop.permute.xlu2 %876 }
0x1496   :  { %v879_v61 = vsel %vm160_vm4, %v877_v60, %v868_v56 }
0x1497   :  { %v881_v23 = vrot.slane %v879_v61, 1 }
0x1499   :  { %1486 = vmatmul.msk.f32.vlgmr.msrb.gmra.mxu3 %vm590_vm2, %v881_v23 }
0x149a   :  { %1288 = vmatpush.msrb.mxu3 %v1938_v15 }
0x149c   :  { %1289 = vmatpush.msrb.mxu3 %v1943_v16 }
0x149e   :  { %1290 = vmatpush.msrb.mxu3 %v1950_v17 }
0x14a0   :  { %1291 = vmatpush.msrb.mxu3 %v1959_v10 }
0x14a2   :  { %1292 = vmatpush.msrb.mxu3 %v1968_v18 }
0x14a4   :  { %1293 = vmatpush.msrb.mxu3 %v1977_v19 }
0x14a6   :  { %1294 = vmatpush.msrb.mxu3 %v1986_v24 }
0x14a8   :  { %1295 = vmatpush.msrb.mxu3 %v2002_v8 }
0x151c   :  { %v901_v62 = vpop.f32.mrf.mxu3 }
0x151d   :  { %v2058_v63 = vadd.f32 %v901_v62, %v2030_v28 }
0x151f   :  { %1487 = vmatmul.msk.f32.vlgmr.msrb.gmra.mxu1 %vm160_vm4, %v2058_v63  ;;  %v955_v32 = vrot.slane %v2058_v63, 6 }
0x1520   :  { %1319 = vmatpush.msrb.mxu1 %v1882_v25 }
0x1522   :  { %1320 = vmatpush.msrb.mxu1 %v1887_v26 }
0x1524   :  { %1321 = vmatpush.msrb.mxu1 %v1908_v35 }
0x1526   :  { %1322 = vmatpush.msrb.mxu1 %v1914_v36 }
0x159c   :  { %v928_v0 = vpop.f32.mrf.mxu1 }
0x159d   :  { %v932_v1 = vrot.slane %v928_v0, 6 }
0x159f   :  { %v934_v2 = vadd.f32 %v932_v1, %v1929_v50 }
0x15a1   :  { %1577 = vtanh.f32 %v934_v2  ;;  %v1488_v4 = vmul.f32 -1.442695, %v934_v2 }
0x15a3   :  { %1579 = vpow2.f32 %v1488_v4 }
0x15a7   :  { %v1578_v3 = vpop.eup %1577 }
0x15a8   :  { %959 = vrot.lane.b32.xlu0 %v1578_v3, %s1628_s5 }
0x15a9   :  { %v1580_v6 = vpop.eup %1579 }
0x15aa   :  { %v938_v11 = vadd.f32 1.0, %v1580_v6 }
0x15ac   :  { %1581 = vrcp.f32 %v938_v11  ;;  %v950_v36 = vand.u32 2147483648, %v938_v11  ;;  %vm944_vm12 = vweird.f32 %v938_v11  ;;  %v948_v5 = vand.u32 2147483647, %v938_v11 }
0x15ae   :  { %v951_v9 = vor.u32 1.1754944e-38, %v950_v36  ;;  %vm949_vm14 = vcmp.eq.f32.partialorder %v948_v5, 8.507059e+37 }
0x15b2   :  { %v1582_v25 = vpop.eup %1581 }
0x15b3   :  { %v940_v13 = vmul.f32 %v1582_v25, %v938_v11  ;;  %vm945_vm11 = vweird.f32 %v1582_v25 }
0x15b4   :  { %vm946_vm13 = vmor %vm944_vm12, %vm945_vm11 }
0x15b5   :  { %v941_v26 = vsub.f32 1.0, %v940_v13 }
0x15b7   :  { %v942_v14 = vmul.f32 %v1582_v25, %v941_v26 }
0x15b9   :  { %v943_v35 = vadd.f32 %v1582_v25, %v942_v14 }
0x15bb   :  { %v947_v7 = vsel %vm946_vm13, %v1582_v25, %v943_v35 }
0x15bc   :  { %v952_v27 = vsel %vm949_vm14, %v951_v9, %v947_v7 }
0x15bd   :  { %v957_v33 = vmul.f32 %v955_v32, %v952_v27 }
0x161a   :  { %v960_v12 = vpop.permute.xlu0 %959 }
0x161b   :  { %v962_v30 = vmul.f32 %v960_v12, %v952_v27 }
0x161d   :  { %964 = vrot.lane.b32.xlu1 %v962_v30, %s1629_s16 }
0x168f   :  { %v965_v22 = vpop.permute.xlu1 %964 }
0x1690   :  { %v967_v34 = vadd.f32 %v965_v22, %v957_v33 }
0x1692   :  { %1583 = vtanh.f32 %v967_v34 }
0x1698   :  { %v1584_v37 = vpop.eup %1583 }
0x1699   :  { %970 = vrot.lane.b32.xlu2 %v1584_v37, %s1628_s5 }
0x16f3   :  { %v971_v38 = vpop.permute.xlu2 %970 }
0x16f4   :  { %v973_v39 = vmul.f32 %v971_v38, %v952_v27 }
0x16f6   :  { %975 = vrot.lane.b32.xlu0 %v973_v39, %s1629_s16 }
0x1768   :  { %v976_v40 = vpop.permute.xlu0 %975 }
0x1769   :  { %v978_v41 = vsel %vm160_vm4, %v976_v40, %v967_v34 }
0x176a   :  { %v980_v42 = vrot.slane %v978_v41, 2 }
0x176c   :  { %1489 = vmatmul.msk.f32.vlgmr.msrb.gmra.mxu2 %vm590_vm2, %v980_v42 }
0x176d   :  { %1387 = vmatpush.msrb.mxu2 %v1938_v15 }
0x176f   :  { %1388 = vmatpush.msrb.mxu2 %v1943_v16 }
0x1771   :  { %1389 = vmatpush.msrb.mxu2 %v1950_v17 }
0x1773   :  { %1390 = vmatpush.msrb.mxu2 %v1959_v10 }
0x1775   :  { %1391 = vmatpush.msrb.mxu2 %v1968_v18 }
0x1777   :  { %1392 = vmatpush.msrb.mxu2 %v1977_v19 }
0x1779   :  { %1393 = vmatpush.msrb.mxu2 %v1986_v24 }
0x177b   :  { %1394 = vmatpush.msrb.mxu2 %v2002_v8 }
0x17ef   :  { %v1000_v43 = vpop.f32.mrf.mxu2 }
0x17f0   :  { %v2083_v44 = vadd.f32 %v1000_v43, %v2030_v28 }
0x17f2   :  { %1490 = vmatmul.msk.f32.vlgmr.msrb.gmra.mxu0 %vm160_vm4, %v2083_v44  ;;  %v1054_v57 = vrot.slane %v2083_v44, 5 }
0x186f   :  { %v1027_v15 = vpop.f32.mrf.mxu0 }
0x1870   :  { %v1031_v16 = vrot.slane %v1027_v15, 5 }
0x1872   :  { %v1033_v17 = vadd.f32 %v1031_v16, %v1929_v50 }
0x1874   :  { %1585 = vtanh.f32 %v1033_v17  ;;  %v1491_v18 = vmul.f32 -1.442695, %v1033_v17 }
0x1876   :  { %1587 = vpow2.f32 %v1491_v18 }
0x187a   :  { %v1586_v10 = vpop.eup %1585 }
0x187b   :  { %1058 = vrot.lane.b32.xlu1 %v1586_v10, %s1628_s5 }
0x187c   :  { %v1588_v19 = vpop.eup %1587 }
0x187d   :  { %v1037_v24 = vadd.f32 1.0, %v1588_v19 }
0x187f   :  { %1589 = vrcp.f32 %v1037_v24  ;;  %v1049_v49 = vand.u32 2147483648, %v1037_v24  ;;  %vm1043_vm1 = vweird.f32 %v1037_v24  ;;  %v1047_v51 = vand.u32 2147483647, %v1037_v24 }
0x1881   :  { %v1050_v53 = vor.u32 1.1754944e-38, %v1049_v49  ;;  %vm1048_vm5 = vcmp.eq.f32.partialorder %v1047_v51, 8.507059e+37 }
0x1885   :  { %v1590_v8 = vpop.eup %1589 }
0x1886   :  { %v1039_v45 = vmul.f32 %v1590_v8, %v1037_v24  ;;  %vm1044_vm15 = vweird.f32 %v1590_v8 }
0x1887   :  { %vm1045_vm3 = vmor %vm1043_vm1, %vm1044_vm15 }
0x1888   :  { %v1040_v46 = vsub.f32 1.0, %v1039_v45 }
0x188a   :  { %v1041_v47 = vmul.f32 %v1590_v8, %v1040_v46 }
0x188c   :  { %v1042_v48 = vadd.f32 %v1590_v8, %v1041_v47 }
0x188e   :  { %v1046_v52 = vsel %vm1045_vm3, %v1590_v8, %v1042_v48  ;;  %vm808_vm3 = vcmask 221184  }
0x188f   :  { %v1051_v55 = vsel %vm1048_vm5, %v1050_v53, %v1046_v52  ;;  %vm1424_vm5 = vcmask 1046528  }
0x1890   :  { %v1056_v58 = vmul.f32 %v1054_v57, %v1051_v55 }
0x18ed   :  { %v1059_v54 = vpop.permute.xlu1 %1058 }
0x18ee   :  { %v1061_v56 = vmul.f32 %v1059_v54, %v1051_v55 }
0x18f0   :  { %1063 = vrot.lane.b32.xlu2 %v1061_v56, %s1629_s16 }
0x194a   :  { %v1064_v59 = vpop.permute.xlu2 %1063 }
0x194b   :  { %v1066_v60 = vadd.f32 %v1064_v59, %v1056_v58 }
0x194d   :  { %1591 = vtanh.f32 %v1066_v60 }
0x1953   :  { %v1592_v61 = vpop.eup %1591 }
0x1954   :  { %1069 = vrot.lane.b32.xlu0 %v1592_v61, %s1628_s5 }
0x19c6   :  { %v1070_v23 = vpop.permute.xlu0 %1069 }
0x19c7   :  { %v1072_v62 = vmul.f32 %v1070_v23, %v1051_v55 }
0x19c9   :  { %1074 = vrot.lane.b32.xlu1 %v1072_v62, %s1629_s16 }
0x1a3b   :  { %v1075_v0 = vpop.permute.xlu1 %1074 }
0x1a3c   :  { %v1077_v1 = vsel %vm160_vm4, %v1075_v0, %v1066_v60 }
0x1a3d   :  { %v1079_v2 = vrot.slane %v1077_v1, 3 }
0x1a3f   :  { %1492 = vmatmul.msk.f32.vlgmr.msra.gmra.mxu1 %vm590_vm2, %v1079_v2 }
0x1abc   :  { %v1099_v3 = vpop.f32.mrf.mxu1 }
0x1abd   :  { %v2096_v4 = vadd.f32 %v1099_v3, %v2030_v28 }
0x1abf   :  { %1493 = vmatmul.msk.f32.vlgmr.msra.gmra.mxu3 %vm160_vm4, %v2096_v4  ;;  %v1153_v38 = vrot.slane %v2096_v4, 4 }
0x1b42   :  { %v1126_v6 = vpop.f32.mrf.mxu3 }
0x1b43   :  { %v1130_v11 = vrot.slane %v1126_v6, 4 }
0x1b45   :  { %v1132_v25 = vadd.f32 %v1130_v11, %v1929_v50 }
0x1b47   :  { %1593 = vtanh.f32 %v1132_v25  ;;  %v1494_v26 = vmul.f32 -1.442695, %v1132_v25 }
0x1b49   :  { %1595 = vpow2.f32 %v1494_v26 }
0x1b4d   :  { %v1594_v13 = vpop.eup %1593 }
0x1b4e   :  { %1157 = vrot.lane.b32.xlu2 %v1594_v13, %s1628_s5 }
0x1b4f   :  { %v1596_v14 = vpop.eup %1595 }
0x1b50   :  { %v1136_v35 = vadd.f32 1.0, %v1596_v14 }
0x1b52   :  { %1597 = vrcp.f32 %v1136_v35  ;;  %v1148_v27 = vand.u32 2147483648, %v1136_v35  ;;  %vm1142_vm6 = vweird.f32 %v1136_v35  ;;  %v1146_v30 = vand.u32 2147483647, %v1136_v35 }
0x1b54   :  { %v1149_v33 = vor.u32 1.1754944e-38, %v1148_v27  ;;  %vm1147_vm8 = vcmp.eq.f32.partialorder %v1146_v30, 8.507059e+37 }
0x1b58   :  { %v1598_v36 = vpop.eup %1597 }
0x1b59   :  { %v1138_v5 = vmul.f32 %v1598_v36, %v1136_v35  ;;  %vm1143_vm0 = vweird.f32 %v1598_v36 }
0x1b5a   :  { %vm1144_vm7 = vmor %vm1142_vm6, %vm1143_vm0  ;;  %vm1445_vm6 = vcmask 7168  }
0x1b5b   :  { %v1139_v7 = vsub.f32 1.0, %v1138_v5 }
0x1b5d   :  { %v1140_v9 = vmul.f32 %v1598_v36, %v1139_v7 }
0x1b5f   :  { %v1141_v12 = vadd.f32 %v1598_v36, %v1140_v9 }
0x1b61   :  { %v1145_v32 = vsel %vm1144_vm7, %v1598_v36, %v1141_v12  ;;  %vm1447_vm7 = vcmask 15360  }
0x1b62   :  { %v1150_v34 = vsel %vm1147_vm8, %v1149_v33, %v1145_v32  ;;  %vm1449_vm8 = vcmask 23552  }
0x1b63   :  { %v1155_v39 = vmul.f32 %v1153_v38, %v1150_v34 }
0x1ba8   :  { %v1158_v22 = vpop.permute.xlu2 %1157 }
0x1ba9   :  { %v1160_v37 = vmul.f32 %v1158_v22, %v1150_v34 }
0x1bab   :  { %1162 = vrot.lane.b32.xlu0 %v1160_v37, %s1629_s16 }
0x1c1d   :  { %v1163_v40 = vpop.permute.xlu0 %1162 }
0x1c1e   :  { %v1165_v41 = vadd.f32 %v1163_v40, %v1155_v39 }
0x1c20   :  { %1599 = vtanh.f32 %v1165_v41 }
0x1c26   :  { %v1600_v42 = vpop.eup %1599 }
0x1c27   :  { %1168 = vrot.lane.b32.xlu1 %v1600_v42, %s1628_s5 }
0x1c99   :  { %v1169_v43 = vpop.permute.xlu1 %1168 }
0x1c9a   :  { %v1171_v15 = vmul.f32 %v1169_v43, %v1150_v34 }
0x1c9c   :  { %1173 = vrot.lane.b32.xlu2 %v1171_v15, %s1629_s16 }
0x1cf6   :  { %v1174_v16 = vpop.permute.xlu2 %1173 }
0x1cf7   :  { %v1176_v17 = vsel %vm160_vm4, %v1174_v16, %v1165_v41 }
0x1cf8   :  { %v1178_v10 = vrot.slane %v1176_v17, 4 }
0x1cfa   :  { %1495 = vmatmul.msk.f32.vlgmr.msra.gmra.mxu0 %vm590_vm2, %v1178_v10 }
0x1d77   :  { %v1198_v18 = vpop.f32.mrf.mxu0 }
0x1d78   :  { %v2109_v19 = vadd.f32 %v1198_v18, %v2030_v28 }
0x1d7a   :  { %1496 = vmatmul.msk.f32.vlgmr.msra.gmra.mxu2 %vm160_vm4, %v2109_v19  ;;  %v1252_v62 = vrot.slane %v2109_v19, 3 }
0x1dfd   :  { %v1225_v24 = vpop.f32.mrf.mxu2 }
0x1dfe   :  { %v1229_v8 = vrot.slane %v1225_v24, 3 }
0x1e00   :  { %v1231_v45 = vadd.f32 %v1229_v8, %v1929_v50 }
0x1e02   :  { %1601 = vtanh.f32 %v1231_v45  ;;  %v1497_v47 = vmul.f32 -1.442695, %v1231_v45 }
0x1e04   :  { %1603 = vpow2.f32 %v1497_v47 }
0x1e08   :  { %v1602_v46 = vpop.eup %1601 }
0x1e09   :  { %1256 = vrot.lane.b32.xlu0 %v1602_v46, %s1628_s5 }
0x1e0a   :  { %v1604_v48 = vpop.eup %1603 }
0x1e0b   :  { %v1235_v49 = vadd.f32 1.0, %v1604_v48 }
0x1e0d   :  { %1605 = vrcp.f32 %v1235_v49  ;;  %v1247_v56 = vand.u32 2147483648, %v1235_v49  ;;  %vm1241_vm10 = vweird.f32 %v1235_v49  ;;  %v1245_v57 = vand.u32 2147483647, %v1235_v49 }
0x1e0f   :  { %v1248_v59 = vor.u32 1.1754944e-38, %v1247_v56  ;;  %vm1246_vm12 = vcmp.eq.f32.partialorder %v1245_v57, 8.507059e+37 }
0x1e13   :  { %v1606_v51 = vpop.eup %1605 }
0x1e14   :  { %v1237_v52 = vmul.f32 %v1606_v51, %v1235_v49  ;;  %vm1242_vm9 = vweird.f32 %v1606_v51 }
0x1e15   :  { %vm1243_vm11 = vmor %vm1241_vm10, %vm1242_vm9  ;;  %vm1451_vm9 = vcmask 24576  }
0x1e16   :  { %v1238_v53 = vsub.f32 1.0, %v1237_v52 }
0x1e18   :  { %v1239_v54 = vmul.f32 %v1606_v51, %v1238_v53 }
0x1e1a   :  { %v1240_v55 = vadd.f32 %v1606_v51, %v1239_v54 }
0x1e1c   :  { %v1244_v58 = vsel %vm1243_vm11, %v1606_v51, %v1240_v55 }
0x1e1d   :  { %v1249_v61 = vsel %vm1246_vm12, %v1248_v59, %v1244_v58 }
0x1e1e   :  { %v1254_v0 = vmul.f32 %v1252_v62, %v1249_v61 }
0x1e7b   :  { %v1257_v60 = vpop.permute.xlu0 %1256 }
0x1e7c   :  { %v1259_v23 = vmul.f32 %v1257_v60, %v1249_v61 }
0x1e7e   :  { %1261 = vrot.lane.b32.xlu1 %v1259_v23, %s1629_s16 }
0x1ef0   :  { %v1262_v1 = vpop.permute.xlu1 %1261 }
0x1ef1   :  { %v1264_v2 = vadd.f32 %v1262_v1, %v1254_v0 }
0x1ef3   :  { %1607 = vtanh.f32 %v1264_v2 }
0x1ef9   :  { %v1608_v3 = vpop.eup %1607 }
0x1efa   :  { %1267 = vrot.lane.b32.xlu2 %v1608_v3, %s1628_s5 }
0x1f54   :  { %v1268_v6 = vpop.permute.xlu2 %1267 }
0x1f55   :  { %v1270_v11 = vmul.f32 %v1268_v6, %v1249_v61 }
0x1f57   :  { %1272 = vrot.lane.b32.xlu0 %v1270_v11, %s1629_s16 }
0x1fc9   :  { %v1273_v25 = vpop.permute.xlu0 %1272 }
0x1fca   :  { %v1275_v13 = vsel %vm160_vm4, %v1273_v25, %v1264_v2 }
0x1fcb   :  { %v1277_v26 = vrot.slane %v1275_v13, 5 }
0x1fcd   :  { %1498 = vmatmul.msk.f32.vlgmr.msrb.gmra.mxu3 %vm590_vm2, %v1277_v26 }
0x2050   :  { %v1297_v14 = vpop.f32.mrf.mxu3 }
0x2051   :  { %v1298_v35 = vadd.f32 %v1297_v14, %v2030_v28 }
0x2053   :  { %1499 = vmatmul.msk.f32.vlgmr.msrb.gmra.mxu1 %vm160_vm4, %v1298_v35  ;;  %v1351_v15 = vrot.slane %v1298_v35, 2 }
0x20d0   :  { %v1324_v36 = vpop.f32.mrf.mxu1 }
0x20d1   :  { %v1328_v5 = vrot.slane %v1324_v36, 2 }
0x20d3   :  { %v1330_v7 = vadd.f32 %v1328_v5, %v1929_v50 }
0x20d5   :  { %1609 = vtanh.f32 %v1330_v7  ;;  %v1500_v12 = vmul.f32 -1.442695, %v1330_v7 }
0x20d7   :  { %1611 = vpow2.f32 %v1500_v12 }
0x20db   :  { %v1610_v9 = vpop.eup %1609 }
0x20dc   :  { %1355 = vrot.lane.b32.xlu1 %v1610_v9, %s1628_s5 }
0x20dd   :  { %v1612_v27 = vpop.eup %1611 }
0x20de   :  { %v1334_v30 = vadd.f32 1.0, %v1612_v27 }
0x20e0   :  { %1613 = vrcp.f32 %v1334_v30  ;;  %v1346_v38 = vand.u32 2147483648, %v1334_v30  ;;  %vm1340_vm14 = vweird.f32 %v1334_v30  ;;  %v1344_v39 = vand.u32 2147483647, %v1334_v30 }
0x20e2   :  { %v1347_v40 = vor.u32 1.1754944e-38, %v1346_v38  ;;  %vm1345_vm1 = vcmp.eq.f32.partialorder %v1344_v39, 8.507059e+37 }
0x20e6   :  { %v1614_v32 = vpop.eup %1613 }
0x20e7   :  { %v1336_v33 = vmul.f32 %v1614_v32, %v1334_v30  ;;  %vm1341_vm13 = vweird.f32 %v1614_v32 }
0x20e8   :  { %vm1342_vm15 = vmor %vm1340_vm14, %vm1341_vm13 }
0x20e9   :  { %v1337_v22 = vsub.f32 1.0, %v1336_v33 }
0x20eb   :  { %v1338_v34 = vmul.f32 %v1614_v32, %v1337_v22 }
0x20ed   :  { %v1339_v37 = vadd.f32 %v1614_v32, %v1338_v34 }
0x20ef   :  { %v1343_v50 = vsel %vm1342_vm15, %v1614_v32, %v1339_v37 }
0x20f0   :  { %v1348_v42 = vsel %vm1345_vm1, %v1347_v40, %v1343_v50 }
0x20f1   :  { %v1353_v16 = vmul.f32 %v1351_v15, %v1348_v42 }
0x214e   :  { %v1356_v41 = vpop.permute.xlu1 %1355 }
0x214f   :  { %v1358_v43 = vmul.f32 %v1356_v41, %v1348_v42 }
0x2151   :  { %1360 = vrot.lane.b32.xlu2 %v1358_v43, %s1629_s16 }
0x2159   :  { %805 = vrot.lane.b32.xlu2 %v2033_v31, %s1628_s5  ;;  %v635_v31 = vmul.f32 1.442695, %v1898_v29 }
0x2161   :  { %1103 = vrot.lane.b32.xlu2 %v2096_v4, %s1628_s5 }
0x21ab   :  { %v1361_v17 = vpop.permute.xlu2 %1360 }
0x21ac   :  { %v1363_v10 = vadd.f32 %v1361_v17, %v1353_v16 }
0x21ae   :  { %1615 = vtanh.f32 %v1363_v10 }
0x21af   :  { %1617 = vpow2.f32 %v635_v31 }
0x21b3   :  { %v806_v18 = vpop.permute.xlu2 %805 }
0x21b4   :  { %v1616_v24 = vpop.eup %1615  ;;  %809 = vst.msk [vmem:[#allocation2] sm:$0x1] %vm808_vm3, %v806_v18 }
0x21b5   :  { %1366 = vrot.lane.b32.xlu0 %v1616_v24, %s1628_s5  ;;  %v1618_v4 = vpop.eup %1617 }
0x21bb   :  { %v1104_v8 = vpop.permute.xlu2 %1103 }
0x21bc   :  { %1106 = vst.msk [vmem:[#allocation2 + $0x3] sm:$0x1] %vm808_vm3, %v1104_v8 }
0x21bd   :  { %905 = vrot.lane.b32.xlu0 %v2058_v63, %s1628_s5 }
0x21c5   :  { %1202 = vrot.lane.b32.xlu0 %v2109_v19, %s1628_s5 }
0x21cd   :  { %638 = vrot.lane.b32.xlu0 %v1618_v4, %s1631_s24 }
0x2227   :  { %v1367_v45 = vpop.permute.xlu0 %1366 }
0x2228   :  { %v1369_v46 = vmul.f32 %v1367_v45, %v1348_v42  ;;  %v1442_v42 = vstv %s2181_s1 }
0x222a   :  { %1371 = vrot.lane.b32.xlu1 %v1369_v46, %s1629_s16 }
0x222f   :  { %v906_v47 = vpop.permute.xlu0 %905 }
0x2230   :  { %908 = vst.msk [vmem:[#allocation2 + $0x1] sm:$0x1] %vm808_vm3, %v906_v47 }
0x2232   :  { %1004 = vrot.lane.b32.xlu1 %v2083_v44, %s1628_s5  ;;  %v634_v44 = vmul.f32 %v1898_v29, %v1898_v29 }
0x2237   :  { %v1203_v63 = vpop.permute.xlu0 %1202 }
0x2238   :  { %1205 = vst.msk [vmem:[#allocation2 + $0x4] sm:$0x1] %vm808_vm3, %v1203_v63 }
0x223a   :  { %1301 = vrot.lane.b32.xlu1 %v1298_v35, %s1628_s5 }
0x223f   :  { %v639_v52 = vpop.permute.xlu0 %638 }
0x2240   :  { %v641_v54 = vadd.f32 %v639_v52, %v634_v44 }
0x2242   :  { %643 = vrot.lane.b32.xlu1 %v1898_v29, %s1631_s24  ;;  %v1478_v55 = vadd.f32 -1.0, %v641_v54 }
0x229c   :  { %v1372_v19 = vpop.permute.xlu1 %1371 }
0x229d   :  { %v1374_v48 = vsel %vm160_vm4, %v1372_v19, %v1363_v10  ;;  %vm1405_vm4 = vcmask 227328  }
0x229e   :  { %v1376_v49 = vrot.slane %v1374_v48, 6 }
0x22a0   :  { %1501 = vmatmul.msk.f32.vlgmr.msrb.gmra.mxu2 %vm590_vm2, %v1376_v49  ;;  %vm647_vm2 = vcmask 188416  }
0x22a4   :  { %v1005_v51 = vpop.permute.xlu1 %1004 }
0x22a5   :  { %1007 = vst.msk [vmem:[#allocation2 + $0x2] sm:$0x1] %vm808_vm3, %v1005_v51 }
0x22ac   :  { %v1302_v53 = vpop.permute.xlu1 %1301 }
0x22ad   :  { %1304 = vst.msk [vmem:[#allocation2 + $0x5] sm:$0x1] %vm808_vm3, %v1302_v53 }
0x22b4   :  { %v644_v56 = vpop.permute.xlu1 %643 }
0x22b5   :  { %v646_v57 = vsub.f32 %v1478_v55, %v644_v56 }
0x22b7   :  { %653 = vrot.lane.b32.xlu0 %v646_v57, %s1628_s5  ;;  %v648_v0 = vsel %vm647_vm2, %v646_v57, 0.0 }
0x2323   :  { %v1396_v58 = vpop.f32.mrf.mxu2 }
0x2324   :  { %v1397_v59 = vadd.f32 %v1396_v58, %v2030_v28 }
0x2326   :  { %1400 = vrot.lane.b32.xlu2 %v1397_v59, %s1628_s5 }
0x2329   :  { %v654_v28 = vpop.permute.xlu0 %653 }
0x232a   :  { %v656_v1 = vsel %vm647_vm2, %v654_v28, 0.0 }
0x2380   :  { %v1401_v60 = vpop.permute.xlu2 %1400 }
0x2381   :  { %1403 = vst.msk [vmem:[#allocation2 + $0x6] sm:$0x1] %vm808_vm3, %v1401_v60 }
0x2388   :  { %v1404_v61 = vld [vmem:[#allocation2] sm:$0x7f] }
0x2389   :  { %v1406_v29 = vsel %vm1405_vm4, %v1404_v61, -inf  ;;  %v1419_v23 = vmul.f32 %v1404_v61, %v123_v21 }
0x238a   :  { %1407 = vmax.xlane.f32.xlu2 %v1406_v29 }
0x238b   :  { %v1420_v62 = vsel %vm1405_vm4, %v1419_v23, 0.0 }
0x238c   :  { %1421 = vadd.xlane.f32.xlu0 %v1420_v62 }
0x2392   :  { %649 = vadd.xlane.f32.xlu2 %v648_v0 }
0x239a   :  { %657 = vadd.xlane.f32.xlu2 %v656_v1 }
0x23fd   :  { %v1408_v2 = vpop.xlane.xlu2 %1407 }
0x23fe   :  { %v1409_v3 = vsub.f32 %v1404_v61, %v1408_v2 }
0x23ff   :  { %v1422_v7 = vpop.xlane.xlu0 %1421 }
0x2400   :  { %v1410_v6 = vmul.f32 1.442695, %v1409_v3 }
0x2402   :  { %1619 = vpow2.f32 %v1410_v6 }
0x2403   :  { %1621 = vrcp.f32 %v1632_v20 }
0x2405   :  { %v650_v26 = vpop.xlane.xlu2 %649 }
0x2406   :  { %v651_v39 = vmul.f32 0.5, %v650_v26 }
0x2408   :  { %v1620_v11 = vpop.eup %1619 }
0x2409   :  { %v1412_v25 = vsel %vm1405_vm4, %v1620_v11, 0.0  ;;  %v1622_v13 = vpop.eup %1621 }
0x240a   :  { %1413 = vadd.xlane.f32.xlu1 %v1412_v25  ;;  %v1433_v35 = vmul.f32 7.0, %v1622_v13  ;;  %vm1437_vm0 = vweird.f32 %v1622_v13 }
0x240c   :  { %v1434_v9 = vsub.f32 1.0, %v1433_v35 }
0x240d   :  { %v658_v32 = vpop.xlane.xlu2 %657 }
0x240e   :  { %v1435_v33 = vmul.f32 %v1622_v13, %v1434_v9  ;;  %v659_v34 = vmul.f32 0.5, %v658_v32 }
0x2410   :  { %v1436_v38 = vadd.f32 %v1622_v13, %v1435_v33  ;;  %v1440_v40 = vadd.f32 %v659_v34, %v651_v39 }
0x2412   :  { %v1438_v43 = vsel %vm1437_vm0, %v1622_v13, %v1436_v38  ;;  %v1443_v16 = vmul.f32 %v1442_v42, %v1440_v40 }
0x247d   :  { %v1414_v21 = vpop.xlane.xlu1 %1413 }
0x247e   :  { %1623 = vlog2.f32 %v1414_v21 }
0x2484   :  { %v1624_v14 = vpop.eup %1623 }
0x2485   :  { %v1416_v36 = vmul.f32 0.6931472, %v1624_v14 }
0x2487   :  { %v1417_v5 = vadd.f32 %v1416_v36, %v1408_v2 }
0x2489   :  { %v1423_v12 = vsub.f32 %v1417_v5, %v1422_v7 }
0x248b   :  { %v1425_v27 = vsel %vm1424_vm5, %v1423_v12, 0.0 }
0x248c   :  { %v1426_v30 = vrot.slane %v1425_v27, 4 }
0x248e   :  { %v1427_v22 = vadd.f32 %v1426_v30, %v1425_v27 }
0x2490   :  { %v1428_v37 = vrot.slane %v1427_v22, 2 }
0x2492   :  { %v1429_v50 = vadd.f32 %v1428_v37, %v1427_v22 }
0x2494   :  { %v1430_v41 = vrot.slane %v1429_v50, 1 }
0x2496   :  { %v1431_v15 = vadd.f32 %v1430_v41, %v1429_v50 }
0x2498   :  { %v1439_v17 = vmul.f32 %v1438_v43, %v1431_v15 }
0x249a   :  { %v1444_v10 = vadd.f32 %v1443_v16, %v1439_v17 }
0x249c   :  { %v1446_v18 = vsel %vm1445_vm6, %v1444_v10, %v1439_v17 }
0x249d   :  { %v1448_v24 = vsel %vm1447_vm7, %v1446_v18, %v651_v39 }
0x249e   :  { %v1450_v8 = vsel %vm1449_vm8, %v1448_v24, %v659_v34 }
0x249f   :  { %1452 = vst.msk [vmem:[%s2182_s14] sm:$0x1] %vm1451_vm9, %v1450_v8 }

</bundles_post_ra>
